<compile_context>
chip_gen: v5e
topology: v5e:2x2
jax: 0.10.0
libtpu: 0.0.40
codegen_flags: <defaults>
</compile_context>

<pallas_src>
import jax
import jax.numpy as jnp
from jax.experimental import pallas as pl
from jax.experimental.pallas import tpu as pltpu


# ------------------------------ kernel body -------------------------------- #

def _make_fused_kernel(n_blocks, K, L, Bt, C):
    """Whole-network kernel.  Ref order:
       x, stem_w, stem_b, [w1, b1, w2, b2] * n_blocks, cls_wT, cls_b, pool, out.
    Activation layout inside the kernel: (channels, Bt*L)  (lanes = batch*time).
    """
    N = Bt * L
    left = (K - 1) // 2  # PyTorch-style 'same' padding: pad_left = (K-1)//2

    def kernel(*refs):
        x_ref = refs[0]
        stem_w_ref, stem_b_ref = refs[1], refs[2]
        blk_refs = refs[3:3 + 4 * n_blocks]
        cls_wT_ref = refs[3 + 4 * n_blocks]
        cls_b_ref = refs[4 + 4 * n_blocks]
        pool_ref = refs[5 + 4 * n_blocks]
        o_ref = refs[6 + 4 * n_blocks]

        # Per-tap validity masks over the combined batch*time lane axis.
        # They implement both the zero 'same' padding and the sample boundary
        # (so a lane-roll never leaks data between samples).
        lane = jax.lax.broadcasted_iota(jnp.int32, (1, N), 1)
        t_loc = lane % L
        masks = []
        for k in range(K):
            s = k - left
            masks.append(jnp.logical_and(t_loc >= -s, t_loc < L - s))

        def taps_of(h):
            """K shifted copies of h (rows, N); zero outside each sample."""
            out = []
            for k in range(K):
                s = k - left
                if s == 0:
                    xs = h
                else:
                    xs = pltpu.roll(h, shift=(-s) % N, axis=1)  # XLU lane shift
                    xs = jnp.where(masks[k], xs, 0.0)
                out.append(xs)
            return out

        def conv_bn(h, w_ref, b_ref):
            """'Same' conv with folded BN:
               (Cout, K*Cin) bf16 @ stacked taps (K*Cin, N) bf16 -> (Cout, N) f32."""
            cols = jnp.concatenate(
                [t.astype(jnp.bfloat16) for t in taps_of(h)], axis=0)
            y = jax.lax.dot_general(
                w_ref[...], cols,
                dimension_numbers=(((1,), (0,)), ((), ())),
                preferred_element_type=jnp.float32)
            return y + b_ref[...]

        # ---- stem conv (Cin = 1): 7 VPU multiply-adds, no MXU pass ----------
        x_row = x_ref[...]                                  # (1, N) f32
        sw = stem_w_ref[...]                                # (C, K) f32
        acc = jnp.zeros((C, N), jnp.float32)
        for k, xs in enumerate(taps_of(x_row)):
            acc = acc + sw[:, k:k + 1] * xs                 # (C,1)*(1,N) FMA
        h = jnp.maximum(acc + stem_b_ref[...], 0.0)         # (C, N)

        # ---- post-activation residual blocks --------------------------------
        for i in range(n_blocks):
            w1, b1, w2, b2 = blk_refs[4 * i:4 * i + 4]
            shortcut = h
            o = jnp.maximum(conv_bn(h, w1, b1), 0.0)
            o = conv_bn(o, w2, b2)
            h = jnp.maximum(o + shortcut, 0.0)

        # ---- global average pool over time (per sample) ---------------------
        # pool: (N, Bt) with P[b*L+t, b] = 1/L  ->  enc (C, Bt), exact f32.
        enc = jax.lax.dot_general(
            h, pool_ref[...],
            dimension_numbers=(((1,), (0,)), ((), ())),
            preferred_element_type=jnp.float32)

        # ---- classifier head (tiny, f32), written as (n_classes, Bt) --------
        logits_t = jnp.dot(cls_wT_ref[...], enc,
                           preferred_element_type=jnp.float32) + cls_b_ref[...]
        o_ref[...] = logits_t.reshape(o_ref.shape)

    return kernel


# ------------------------------ host wrapper ------------------------------- #

def _fold_bn_T(w, b, bn, eps=1e-5):
    """Fold eval-mode BN(conv(x)) into the conv and pre-transpose for the MXU.

    w: (K, Cin, Cout), b: (Cout,)  ->  w_t: (Cout, K*Cin), b_col: (Cout, 1).
    Row order of w_t matches the kernel's tap stack (tap-major, cin-minor).
    """
    gamma, beta, mu, var = (p.reshape(-1) for p in bn)
    scale = gamma * jax.lax.rsqrt(var + eps)                    # (Cout,)
    K, Cin, Cout = w.shape
    w_f = w * scale[None, None, :]                              # (K, Cin, Cout)
    w_t = jnp.transpose(w_f, (2, 0, 1)).reshape(Cout, K * Cin)  # (Cout, K*Cin)
    b_col = ((b - mu) * scale + beta).reshape(Cout, 1)          # (Cout, 1)
    return w_t.astype(jnp.float32), b_col.astype(jnp.float32)


def _const_index_map(nd):
    return lambda g: (0,) * nd


def _pick_batch_tile(B, L, max_lanes=2048):
    """Largest divisor of B whose tile width Bt*L stays a modest lane count."""
    bt = 1
    for cand in range(1, B + 1):
        if B % cand == 0 and cand * L <= max_lanes:
            bt = cand
    return bt


def resnet_ts_classifier(x, params):
    """x: (B, L) -> logits (B, n_classes), single fused Pallas kernel."""
    B, L = x.shape
    K, _, C = params["stem_w"].shape
    n_blocks = len(params["blocks"])
    n_classes = params["cls_w"].shape[1]

    Bt = _pick_batch_tile(B, L)      # for the demo (B=2, L=64): Bt=2 -> 1 step
    nb = B // Bt
    N = Bt * L

    # Fold eval-mode BN into the convs; pre-cast block conv weights to bf16
    # (stem stays f32: it runs on the VPU; biases / head stay f32).
    stem_w_t, stem_b = _fold_bn_T(params["stem_w"], params["stem_b"],
                                  params["stem_bn"])
    flat = [stem_w_t, stem_b]
    for blk in params["blocks"]:
        w1, b1 = _fold_bn_T(blk["w1"], blk["b1"], blk["bn1"])
        w2, b2 = _fold_bn_T(blk["w2"], blk["b2"], blk["bn2"])
        flat += [w1.astype(jnp.bfloat16), b1, w2.astype(jnp.bfloat16), b2]
    flat.append(jnp.transpose(params["cls_w"]).astype(jnp.float32))        # (nc, C)
    flat.append(params["cls_b"].reshape(n_classes, 1).astype(jnp.float32))  # (nc, 1)

    # Per-sample mean-pool matrix (N, Bt): P[b*L+t, b] = 1/L.
    pool = jnp.repeat(jnp.eye(Bt, dtype=jnp.float32), L, axis=0) / float(L)
    flat.append(pool)

    # Lane-dense input: one (Bt*L)-wide row per grid step (batch-major, time-minor).
    x_rows = x.astype(jnp.float32).reshape(nb, N)

    in_specs = [pl.BlockSpec((1, N), lambda g: (g, 0))]
    in_specs += [pl.BlockSpec(w.shape, _const_index_map(w.ndim)) for w in flat]

    # TODO(synk): on v7x with many batch tiles, the batch-tile axis could be
    # split across the two TensorCores (core-parallel) for another ~2x.
    out = pl.pallas_call(
        _make_fused_kernel(n_blocks, K, L, Bt, C),
        out_shape=jax.ShapeDtypeStruct((nb, n_classes, Bt), jnp.float32),
        grid=(nb,),
        in_specs=in_specs,
        out_specs=pl.BlockSpec((1, n_classes, Bt), lambda g: (g, 0, 0)),
        compiler_params=pltpu.CompilerParams(
            dimension_semantics=("parallel",)),
    )(x_rows, *flat)

    # (nb, n_classes, Bt) -> (B, n_classes)
    return jnp.transpose(out, (0, 2, 1)).reshape(B, n_classes)


# --------------------------- parameter creation ---------------------------- #

def _xavier_uniform(key, shape, fan_in, fan_out):
    lim = (6.0 / (fan_in + fan_out)) ** 0.5
    return jax.random.uniform(key, shape, jnp.float32, -lim, lim)


def _xavier_normal(key, shape, fan_in, fan_out):
    std = (2.0 / (fan_in + fan_out)) ** 0.5
    return std * jax.random.normal(key, shape, jnp.float32)


def _bn_params(c):
    return (jnp.ones((1, c), jnp.float32),   # gamma
            jnp.zeros((1, c), jnp.float32),  # beta
            jnp.zeros((1, c), jnp.float32),  # running mean
            jnp.ones((1, c), jnp.float32))   # running var


def init_params(key, base_filters=32, kernel_size=7, n_blocks=2, n_classes=4):
    C, K = base_filters, kernel_size
    keys = jax.random.split(key, 2 * n_blocks + 2)
    params = {
        # stem: Conv1dPadSame(1 -> C), xavier_uniform weight, zero bias
        "stem_w": _xavier_uniform(keys[0], (K, 1, C), 1 * K, C * K),
        "stem_b": jnp.zeros((C,), jnp.float32),
        "stem_bn": _bn_params(C),
        "blocks": [],
        # classifier: Linear(encoding_size -> n_classes), xavier_normal, zero bias
        "cls_w": _xavier_normal(keys[-1], (C, n_classes), C, n_classes),
        "cls_b": jnp.zeros((n_classes,), jnp.float32),
    }
    for i in range(n_blocks):
        params["blocks"].append({
            "w1": _xavier_uniform(keys[1 + 2 * i], (K, C, C), C * K, C * K),
            "b1": jnp.zeros((C,), jnp.float32),
            "bn1": _bn_params(C),
            "w2": _xavier_uniform(keys[2 + 2 * i], (K, C, C), C * K, C * K),
            "b2": jnp.zeros((C,), jnp.float32),
            "bn2": _bn_params(C),
        })
    return params


# ---------------------------------- main ----------------------------------- #

if __name__ == "__main__":
    key = jax.random.PRNGKey(0)
    k_param, k_data = jax.random.split(key)

    B, L = 2, 64
    params = init_params(k_param, base_filters=32, kernel_size=7,
                         n_blocks=2, n_classes=4)
    x = jax.random.normal(k_data, (B, L), jnp.float32)

    logits = jax.jit(resnet_ts_classifier)(x, params)
    jax.block_until_ready(logits)
    assert logits.shape == (B, 4)
    print("KERNEL_OK")
</pallas_src>

<mosaic_0001>
module attributes {stable_mosaic.version = 11 : i64} {
  func.func @kernel(%arg0: i32, %arg1: memref<1x128xf32, #tpu.memory_space<vmem>>, %arg2: memref<32x7xf32, #tpu.memory_space<vmem>>, %arg3: memref<32x1xf32, #tpu.memory_space<vmem>>, %arg4: memref<32x224xbf16, #tpu.memory_space<vmem>>, %arg5: memref<32x1xf32, #tpu.memory_space<vmem>>, %arg6: memref<32x224xbf16, #tpu.memory_space<vmem>>, %arg7: memref<32x1xf32, #tpu.memory_space<vmem>>, %arg8: memref<32x224xbf16, #tpu.memory_space<vmem>>, %arg9: memref<32x1xf32, #tpu.memory_space<vmem>>, %arg10: memref<32x224xbf16, #tpu.memory_space<vmem>>, %arg11: memref<32x1xf32, #tpu.memory_space<vmem>>, %arg12: memref<4x32xf32, #tpu.memory_space<vmem>>, %arg13: memref<4x1xf32, #tpu.memory_space<vmem>>, %arg14: memref<128x2xf32, #tpu.memory_space<vmem>>, %arg15: memref<1x4x2xf32, #tpu.memory_space<vmem>>) attributes {dimension_semantics = [#tpu.dimension_semantics<parallel>], iteration_bounds = array<i64: 1>, scalar_prefetch = 0 : i64, scratch_operands = 0 : i64, tpu.core_type = #tpu.core_type<tc>, window_params = [{transform_indices = @transform_0, window_bounds = array<i64: 1, 128>}, {pipeline_mode = #tpu.pipeline_mode<synchronous>, transform_indices = @transform_1, window_bounds = array<i64: 32, 7>}, {pipeline_mode = #tpu.pipeline_mode<synchronous>, transform_indices = @transform_2, window_bounds = array<i64: 32, 1>}, {pipeline_mode = #tpu.pipeline_mode<synchronous>, transform_indices = @transform_3, window_bounds = array<i64: 32, 224>}, {pipeline_mode = #tpu.pipeline_mode<synchronous>, transform_indices = @transform_4, window_bounds = array<i64: 32, 1>}, {pipeline_mode = #tpu.pipeline_mode<synchronous>, transform_indices = @transform_5, window_bounds = array<i64: 32, 224>}, {pipeline_mode = #tpu.pipeline_mode<synchronous>, transform_indices = @transform_6, window_bounds = array<i64: 32, 1>}, {pipeline_mode = #tpu.pipeline_mode<synchronous>, transform_indices = @transform_7, window_bounds = array<i64: 32, 224>}, {pipeline_mode = #tpu.pipeline_mode<synchronous>, transform_indices = @transform_8, window_bounds = array<i64: 32, 1>}, {pipeline_mode = #tpu.pipeline_mode<synchronous>, transform_indices = @transform_9, window_bounds = array<i64: 32, 224>}, {pipeline_mode = #tpu.pipeline_mode<synchronous>, transform_indices = @transform_10, window_bounds = array<i64: 32, 1>}, {pipeline_mode = #tpu.pipeline_mode<synchronous>, transform_indices = @transform_11, window_bounds = array<i64: 4, 32>}, {pipeline_mode = #tpu.pipeline_mode<synchronous>, transform_indices = @transform_12, window_bounds = array<i64: 4, 1>}, {pipeline_mode = #tpu.pipeline_mode<synchronous>, transform_indices = @transform_13, window_bounds = array<i64: 128, 2>}, {transform_indices = @transform_14, window_bounds = array<i64: 1, 4, 2>}]} {
    %0 = tpu.iota {dimensions = array<i32: 1>} : vector<1x128xi32>
    %c64_i32 = arith.constant 64 : i32
    %c0_i32 = arith.constant 0 : i32
    %1 = arith.cmpi eq, %c64_i32, %c0_i32 : i32
    %c1_i32 = arith.constant 1 : i32
    %2 = arith.select %1, %c1_i32, %c64_i32 : i32
    %3 = vector.broadcast %2 : i32 to vector<1x128xi32>
    %4 = arith.remsi %0, %3 : vector<1x128xi32>
    %c0_i32_0 = arith.constant 0 : i32
    %5 = vector.broadcast %c0_i32_0 : i32 to vector<1x128xi32>
    %6 = arith.cmpi ne, %4, %5 : vector<1x128xi32>
    %c0_i32_1 = arith.constant 0 : i32
    %7 = vector.broadcast %c0_i32_1 : i32 to vector<1x128xi32>
    %8 = arith.cmpi slt, %4, %7 : vector<1x128xi32>
    %c0_i32_2 = arith.constant 0 : i32
    %9 = arith.cmpi slt, %2, %c0_i32_2 : i32
    %10 = vector.broadcast %9 : i1 to vector<1x128xi1>
    %11 = vector.broadcast %10 : vector<1x128xi1> to vector<1x128xi1>
    %12 = arith.xori %8, %11 : vector<1x128xi1>
    %13 = arith.andi %12, %6 : vector<1x128xi1>
    %14 = vector.broadcast %2 : i32 to vector<1x128xi32>
    %15 = arith.addi %4, %14 : vector<1x128xi32>
    %16 = arith.select %13, %15, %4 : vector<1x128xi1>, vector<1x128xi32>
    %c3_i32 = arith.constant 3 : i32
    %17 = vector.broadcast %c3_i32 : i32 to vector<1x128xi32>
    %18 = arith.cmpi sge, %16, %17 : vector<1x128xi32>
    %c67_i32 = arith.constant 67 : i32
    %19 = vector.broadcast %c67_i32 : i32 to vector<1x128xi32>
    %20 = arith.cmpi slt, %16, %19 : vector<1x128xi32>
    %21 = arith.andi %18, %20 : vector<1x128xi1>
    %c2_i32 = arith.constant 2 : i32
    %22 = vector.broadcast %c2_i32 : i32 to vector<1x128xi32>
    %23 = arith.cmpi sge, %16, %22 : vector<1x128xi32>
    %c66_i32 = arith.constant 66 : i32
    %24 = vector.broadcast %c66_i32 : i32 to vector<1x128xi32>
    %25 = arith.cmpi slt, %16, %24 : vector<1x128xi32>
    %26 = arith.andi %23, %25 : vector<1x128xi1>
    %c1_i32_3 = arith.constant 1 : i32
    %27 = vector.broadcast %c1_i32_3 : i32 to vector<1x128xi32>
    %28 = arith.cmpi sge, %16, %27 : vector<1x128xi32>
    %c65_i32 = arith.constant 65 : i32
    %29 = vector.broadcast %c65_i32 : i32 to vector<1x128xi32>
    %30 = arith.cmpi slt, %16, %29 : vector<1x128xi32>
    %31 = arith.andi %28, %30 : vector<1x128xi1>
    %c-1_i32 = arith.constant -1 : i32
    %32 = vector.broadcast %c-1_i32 : i32 to vector<1x128xi32>
    %33 = arith.cmpi sge, %16, %32 : vector<1x128xi32>
    %c63_i32 = arith.constant 63 : i32
    %34 = vector.broadcast %c63_i32 : i32 to vector<1x128xi32>
    %35 = arith.cmpi slt, %16, %34 : vector<1x128xi32>
    %36 = arith.andi %33, %35 : vector<1x128xi1>
    %c-2_i32 = arith.constant -2 : i32
    %37 = vector.broadcast %c-2_i32 : i32 to vector<1x128xi32>
    %38 = arith.cmpi sge, %16, %37 : vector<1x128xi32>
    %c62_i32 = arith.constant 62 : i32
    %39 = vector.broadcast %c62_i32 : i32 to vector<1x128xi32>
    %40 = arith.cmpi slt, %16, %39 : vector<1x128xi32>
    %41 = arith.andi %38, %40 : vector<1x128xi1>
    %c-3_i32 = arith.constant -3 : i32
    %42 = vector.broadcast %c-3_i32 : i32 to vector<1x128xi32>
    %43 = arith.cmpi sge, %16, %42 : vector<1x128xi32>
    %c61_i32 = arith.constant 61 : i32
    %44 = vector.broadcast %c61_i32 : i32 to vector<1x128xi32>
    %45 = arith.cmpi slt, %16, %44 : vector<1x128xi32>
    %46 = arith.andi %43, %45 : vector<1x128xi1>
    %c0 = arith.constant 0 : index
    %c0_4 = arith.constant 0 : index
    %47 = vector.load %arg1[%c0, %c0_4] : memref<1x128xf32, #tpu.memory_space<vmem>>, vector<1x128xf32>
    %c0_5 = arith.constant 0 : index
    %c0_6 = arith.constant 0 : index
    %48 = vector.load %arg2[%c0_5, %c0_6] : memref<32x7xf32, #tpu.memory_space<vmem>>, vector<32x7xf32>
    %cst = arith.constant 0.000000e+00 : f32
    %49 = vector.broadcast %cst : f32 to vector<32x128xf32>
    %c3_i32_7 = arith.constant 3 : i32
    %50 = tpu.dynamic_rotate %47 by %c3_i32_7 dim 1 : vector<1x128xf32>, i32 -> vector<1x128xf32>
    %cst_8 = arith.constant 0.000000e+00 : f32
    %51 = vector.broadcast %cst_8 : f32 to vector<1x128xf32>
    %52 = arith.select %21, %50, %51 : vector<1x128xi1>, vector<1x128xf32>
    %c2_i32_9 = arith.constant 2 : i32
    %53 = tpu.dynamic_rotate %47 by %c2_i32_9 dim 1 : vector<1x128xf32>, i32 -> vector<1x128xf32>
    %cst_10 = arith.constant 0.000000e+00 : f32
    %54 = vector.broadcast %cst_10 : f32 to vector<1x128xf32>
    %55 = arith.select %26, %53, %54 : vector<1x128xi1>, vector<1x128xf32>
    %c1_i32_11 = arith.constant 1 : i32
    %56 = tpu.dynamic_rotate %47 by %c1_i32_11 dim 1 : vector<1x128xf32>, i32 -> vector<1x128xf32>
    %cst_12 = arith.constant 0.000000e+00 : f32
    %57 = vector.broadcast %cst_12 : f32 to vector<1x128xf32>
    %58 = arith.select %31, %56, %57 : vector<1x128xi1>, vector<1x128xf32>
    %c127_i32 = arith.constant 127 : i32
    %59 = tpu.dynamic_rotate %47 by %c127_i32 dim 1 : vector<1x128xf32>, i32 -> vector<1x128xf32>
    %cst_13 = arith.constant 0.000000e+00 : f32
    %60 = vector.broadcast %cst_13 : f32 to vector<1x128xf32>
    %61 = arith.select %36, %59, %60 : vector<1x128xi1>, vector<1x128xf32>
    %c126_i32 = arith.constant 126 : i32
    %62 = tpu.dynamic_rotate %47 by %c126_i32 dim 1 : vector<1x128xf32>, i32 -> vector<1x128xf32>
    %cst_14 = arith.constant 0.000000e+00 : f32
    %63 = vector.broadcast %cst_14 : f32 to vector<1x128xf32>
    %64 = arith.select %41, %62, %63 : vector<1x128xi1>, vector<1x128xf32>
    %c125_i32 = arith.constant 125 : i32
    %65 = tpu.dynamic_rotate %47 by %c125_i32 dim 1 : vector<1x128xf32>, i32 -> vector<1x128xf32>
    %cst_15 = arith.constant 0.000000e+00 : f32
    %66 = vector.broadcast %cst_15 : f32 to vector<1x128xf32>
    %67 = arith.select %46, %65, %66 : vector<1x128xi1>, vector<1x128xf32>
    %68 = vector.extract_strided_slice %48 {offsets = [0, 0], sizes = [32, 1], strides = [1, 1]} : vector<32x7xf32> to vector<32x1xf32>
    %69 = vector.broadcast %68 : vector<32x1xf32> to vector<32x128xf32>
    %70 = vector.broadcast %52 : vector<1x128xf32> to vector<32x128xf32>
    %71 = arith.mulf %69, %70 : vector<32x128xf32>
    %72 = arith.addf %49, %71 : vector<32x128xf32>
    %73 = vector.extract_strided_slice %48 {offsets = [0, 1], sizes = [32, 1], strides = [1, 1]} : vector<32x7xf32> to vector<32x1xf32>
    %74 = vector.broadcast %73 : vector<32x1xf32> to vector<32x128xf32>
    %75 = vector.broadcast %55 : vector<1x128xf32> to vector<32x128xf32>
    %76 = arith.mulf %74, %75 : vector<32x128xf32>
    %77 = arith.addf %72, %76 : vector<32x128xf32>
    %78 = vector.extract_strided_slice %48 {offsets = [0, 2], sizes = [32, 1], strides = [1, 1]} : vector<32x7xf32> to vector<32x1xf32>
    %79 = vector.broadcast %78 : vector<32x1xf32> to vector<32x128xf32>
    %80 = vector.broadcast %58 : vector<1x128xf32> to vector<32x128xf32>
    %81 = arith.mulf %79, %80 : vector<32x128xf32>
    %82 = arith.addf %77, %81 : vector<32x128xf32>
    %83 = vector.extract_strided_slice %48 {offsets = [0, 3], sizes = [32, 1], strides = [1, 1]} : vector<32x7xf32> to vector<32x1xf32>
    %84 = vector.broadcast %83 : vector<32x1xf32> to vector<32x128xf32>
    %85 = vector.broadcast %47 : vector<1x128xf32> to vector<32x128xf32>
    %86 = arith.mulf %84, %85 : vector<32x128xf32>
    %87 = arith.addf %82, %86 : vector<32x128xf32>
    %88 = vector.extract_strided_slice %48 {offsets = [0, 4], sizes = [32, 1], strides = [1, 1]} : vector<32x7xf32> to vector<32x1xf32>
    %89 = vector.broadcast %88 : vector<32x1xf32> to vector<32x128xf32>
    %90 = vector.broadcast %61 : vector<1x128xf32> to vector<32x128xf32>
    %91 = arith.mulf %89, %90 : vector<32x128xf32>
    %92 = arith.addf %87, %91 : vector<32x128xf32>
    %93 = vector.extract_strided_slice %48 {offsets = [0, 5], sizes = [32, 1], strides = [1, 1]} : vector<32x7xf32> to vector<32x1xf32>
    %94 = vector.broadcast %93 : vector<32x1xf32> to vector<32x128xf32>
    %95 = vector.broadcast %64 : vector<1x128xf32> to vector<32x128xf32>
    %96 = arith.mulf %94, %95 : vector<32x128xf32>
    %97 = arith.addf %92, %96 : vector<32x128xf32>
    %98 = vector.extract_strided_slice %48 {offsets = [0, 6], sizes = [32, 1], strides = [1, 1]} : vector<32x7xf32> to vector<32x1xf32>
    %99 = vector.broadcast %98 : vector<32x1xf32> to vector<32x128xf32>
    %100 = vector.broadcast %67 : vector<1x128xf32> to vector<32x128xf32>
    %101 = arith.mulf %99, %100 : vector<32x128xf32>
    %102 = arith.addf %97, %101 : vector<32x128xf32>
    %c0_16 = arith.constant 0 : index
    %c0_17 = arith.constant 0 : index
    %103 = vector.load %arg3[%c0_16, %c0_17] : memref<32x1xf32, #tpu.memory_space<vmem>>, vector<32x1xf32>
    %104 = vector.broadcast %103 : vector<32x1xf32> to vector<32x128xf32>
    %105 = arith.addf %102, %104 : vector<32x128xf32>
    %cst_18 = arith.constant 0.000000e+00 : f32
    %106 = vector.broadcast %cst_18 : f32 to vector<32x128xf32>
    %107 = arith.maximumf %105, %106 : vector<32x128xf32>
    %c3_i32_19 = arith.constant 3 : i32
    %108 = tpu.dynamic_rotate %107 by %c3_i32_19 dim 1 : vector<32x128xf32>, i32 -> vector<32x128xf32>
    %cst_20 = arith.constant 0.000000e+00 : f32
    %109 = vector.shape_cast %21 : vector<1x128xi1> to vector<1x128xi1>
    %110 = vector.broadcast %109 : vector<1x128xi1> to vector<32x128xi1>
    %111 = vector.broadcast %cst_20 : f32 to vector<32x128xf32>
    %112 = arith.select %110, %108, %111 : vector<32x128xi1>, vector<32x128xf32>
    %c2_i32_21 = arith.constant 2 : i32
    %113 = tpu.dynamic_rotate %107 by %c2_i32_21 dim 1 : vector<32x128xf32>, i32 -> vector<32x128xf32>
    %cst_22 = arith.constant 0.000000e+00 : f32
    %114 = vector.shape_cast %26 : vector<1x128xi1> to vector<1x128xi1>
    %115 = vector.broadcast %114 : vector<1x128xi1> to vector<32x128xi1>
    %116 = vector.broadcast %cst_22 : f32 to vector<32x128xf32>
    %117 = arith.select %115, %113, %116 : vector<32x128xi1>, vector<32x128xf32>
    %c1_i32_23 = arith.constant 1 : i32
    %118 = tpu.dynamic_rotate %107 by %c1_i32_23 dim 1 : vector<32x128xf32>, i32 -> vector<32x128xf32>
    %cst_24 = arith.constant 0.000000e+00 : f32
    %119 = vector.shape_cast %31 : vector<1x128xi1> to vector<1x128xi1>
    %120 = vector.broadcast %119 : vector<1x128xi1> to vector<32x128xi1>
    %121 = vector.broadcast %cst_24 : f32 to vector<32x128xf32>
    %122 = arith.select %120, %118, %121 : vector<32x128xi1>, vector<32x128xf32>
    %c127_i32_25 = arith.constant 127 : i32
    %123 = tpu.dynamic_rotate %107 by %c127_i32_25 dim 1 : vector<32x128xf32>, i32 -> vector<32x128xf32>
    %cst_26 = arith.constant 0.000000e+00 : f32
    %124 = vector.shape_cast %36 : vector<1x128xi1> to vector<1x128xi1>
    %125 = vector.broadcast %124 : vector<1x128xi1> to vector<32x128xi1>
    %126 = vector.broadcast %cst_26 : f32 to vector<32x128xf32>
    %127 = arith.select %125, %123, %126 : vector<32x128xi1>, vector<32x128xf32>
    %c126_i32_27 = arith.constant 126 : i32
    %128 = tpu.dynamic_rotate %107 by %c126_i32_27 dim 1 : vector<32x128xf32>, i32 -> vector<32x128xf32>
    %cst_28 = arith.constant 0.000000e+00 : f32
    %129 = vector.shape_cast %41 : vector<1x128xi1> to vector<1x128xi1>
    %130 = vector.broadcast %129 : vector<1x128xi1> to vector<32x128xi1>
    %131 = vector.broadcast %cst_28 : f32 to vector<32x128xf32>
    %132 = arith.select %130, %128, %131 : vector<32x128xi1>, vector<32x128xf32>
    %c125_i32_29 = arith.constant 125 : i32
    %133 = tpu.dynamic_rotate %107 by %c125_i32_29 dim 1 : vector<32x128xf32>, i32 -> vector<32x128xf32>
    %cst_30 = arith.constant 0.000000e+00 : f32
    %134 = vector.shape_cast %46 : vector<1x128xi1> to vector<1x128xi1>
    %135 = vector.broadcast %134 : vector<1x128xi1> to vector<32x128xi1>
    %136 = vector.broadcast %cst_30 : f32 to vector<32x128xf32>
    %137 = arith.select %135, %133, %136 : vector<32x128xi1>, vector<32x128xf32>
    %138 = arith.truncf %112 : vector<32x128xf32> to vector<32x128xbf16>
    %139 = arith.truncf %117 : vector<32x128xf32> to vector<32x128xbf16>
    %140 = arith.truncf %122 : vector<32x128xf32> to vector<32x128xbf16>
    %141 = arith.truncf %107 : vector<32x128xf32> to vector<32x128xbf16>
    %142 = arith.truncf %127 : vector<32x128xf32> to vector<32x128xbf16>
    %143 = arith.truncf %132 : vector<32x128xf32> to vector<32x128xbf16>
    %144 = arith.truncf %137 : vector<32x128xf32> to vector<32x128xbf16>
    %145 = tpu.concatenate %138, %139, %140, %141, %142, %143, %144 in 0 : vector<32x128xbf16>, vector<32x128xbf16>, vector<32x128xbf16>, vector<32x128xbf16>, vector<32x128xbf16>, vector<32x128xbf16>, vector<32x128xbf16> -> vector<224x128xbf16>
    %c0_31 = arith.constant 0 : index
    %c0_32 = arith.constant 0 : index
    %146 = vector.load %arg4[%c0_31, %c0_32] : memref<32x224xbf16, #tpu.memory_space<vmem>>, vector<32x224xbf16>
    %cst_33 = arith.constant dense<0.000000e+00> : vector<32x128xf32>
    %147 = tpu.matmul %146, %145, %cst_33 {dimension_numbers = #tpu.dot_dimension_numbers<[1], [0], [0], [1], [0, 0, 1, 1], [], []>} : vector<32x224xbf16>, vector<224x128xbf16>, vector<32x128xf32> -> vector<32x128xf32>
    %c0_34 = arith.constant 0 : index
    %c0_35 = arith.constant 0 : index
    %148 = vector.load %arg5[%c0_34, %c0_35] : memref<32x1xf32, #tpu.memory_space<vmem>>, vector<32x1xf32>
    %149 = vector.broadcast %148 : vector<32x1xf32> to vector<32x128xf32>
    %150 = arith.addf %147, %149 : vector<32x128xf32>
    %cst_36 = arith.constant 0.000000e+00 : f32
    %151 = vector.broadcast %cst_36 : f32 to vector<32x128xf32>
    %152 = arith.maximumf %150, %151 : vector<32x128xf32>
    %c3_i32_37 = arith.constant 3 : i32
    %153 = tpu.dynamic_rotate %152 by %c3_i32_37 dim 1 : vector<32x128xf32>, i32 -> vector<32x128xf32>
    %cst_38 = arith.constant 0.000000e+00 : f32
    %154 = vector.shape_cast %21 : vector<1x128xi1> to vector<1x128xi1>
    %155 = vector.broadcast %154 : vector<1x128xi1> to vector<32x128xi1>
    %156 = vector.broadcast %cst_38 : f32 to vector<32x128xf32>
    %157 = arith.select %155, %153, %156 : vector<32x128xi1>, vector<32x128xf32>
    %c2_i32_39 = arith.constant 2 : i32
    %158 = tpu.dynamic_rotate %152 by %c2_i32_39 dim 1 : vector<32x128xf32>, i32 -> vector<32x128xf32>
    %cst_40 = arith.constant 0.000000e+00 : f32
    %159 = vector.shape_cast %26 : vector<1x128xi1> to vector<1x128xi1>
    %160 = vector.broadcast %159 : vector<1x128xi1> to vector<32x128xi1>
    %161 = vector.broadcast %cst_40 : f32 to vector<32x128xf32>
    %162 = arith.select %160, %158, %161 : vector<32x128xi1>, vector<32x128xf32>
    %c1_i32_41 = arith.constant 1 : i32
    %163 = tpu.dynamic_rotate %152 by %c1_i32_41 dim 1 : vector<32x128xf32>, i32 -> vector<32x128xf32>
    %cst_42 = arith.constant 0.000000e+00 : f32
    %164 = vector.shape_cast %31 : vector<1x128xi1> to vector<1x128xi1>
    %165 = vector.broadcast %164 : vector<1x128xi1> to vector<32x128xi1>
    %166 = vector.broadcast %cst_42 : f32 to vector<32x128xf32>
    %167 = arith.select %165, %163, %166 : vector<32x128xi1>, vector<32x128xf32>
    %c127_i32_43 = arith.constant 127 : i32
    %168 = tpu.dynamic_rotate %152 by %c127_i32_43 dim 1 : vector<32x128xf32>, i32 -> vector<32x128xf32>
    %cst_44 = arith.constant 0.000000e+00 : f32
    %169 = vector.shape_cast %36 : vector<1x128xi1> to vector<1x128xi1>
    %170 = vector.broadcast %169 : vector<1x128xi1> to vector<32x128xi1>
    %171 = vector.broadcast %cst_44 : f32 to vector<32x128xf32>
    %172 = arith.select %170, %168, %171 : vector<32x128xi1>, vector<32x128xf32>
    %c126_i32_45 = arith.constant 126 : i32
    %173 = tpu.dynamic_rotate %152 by %c126_i32_45 dim 1 : vector<32x128xf32>, i32 -> vector<32x128xf32>
    %cst_46 = arith.constant 0.000000e+00 : f32
    %174 = vector.shape_cast %41 : vector<1x128xi1> to vector<1x128xi1>
    %175 = vector.broadcast %174 : vector<1x128xi1> to vector<32x128xi1>
    %176 = vector.broadcast %cst_46 : f32 to vector<32x128xf32>
    %177 = arith.select %175, %173, %176 : vector<32x128xi1>, vector<32x128xf32>
    %c125_i32_47 = arith.constant 125 : i32
    %178 = tpu.dynamic_rotate %152 by %c125_i32_47 dim 1 : vector<32x128xf32>, i32 -> vector<32x128xf32>
    %cst_48 = arith.constant 0.000000e+00 : f32
    %179 = vector.shape_cast %46 : vector<1x128xi1> to vector<1x128xi1>
    %180 = vector.broadcast %179 : vector<1x128xi1> to vector<32x128xi1>
    %181 = vector.broadcast %cst_48 : f32 to vector<32x128xf32>
    %182 = arith.select %180, %178, %181 : vector<32x128xi1>, vector<32x128xf32>
    %183 = arith.truncf %157 : vector<32x128xf32> to vector<32x128xbf16>
    %184 = arith.truncf %162 : vector<32x128xf32> to vector<32x128xbf16>
    %185 = arith.truncf %167 : vector<32x128xf32> to vector<32x128xbf16>
    %186 = arith.truncf %152 : vector<32x128xf32> to vector<32x128xbf16>
    %187 = arith.truncf %172 : vector<32x128xf32> to vector<32x128xbf16>
    %188 = arith.truncf %177 : vector<32x128xf32> to vector<32x128xbf16>
    %189 = arith.truncf %182 : vector<32x128xf32> to vector<32x128xbf16>
    %190 = tpu.concatenate %183, %184, %185, %186, %187, %188, %189 in 0 : vector<32x128xbf16>, vector<32x128xbf16>, vector<32x128xbf16>, vector<32x128xbf16>, vector<32x128xbf16>, vector<32x128xbf16>, vector<32x128xbf16> -> vector<224x128xbf16>
    %c0_49 = arith.constant 0 : index
    %c0_50 = arith.constant 0 : index
    %191 = vector.load %arg6[%c0_49, %c0_50] : memref<32x224xbf16, #tpu.memory_space<vmem>>, vector<32x224xbf16>
    %cst_51 = arith.constant dense<0.000000e+00> : vector<32x128xf32>
    %192 = tpu.matmul %191, %190, %cst_51 {dimension_numbers = #tpu.dot_dimension_numbers<[1], [0], [0], [1], [0, 0, 1, 1], [], []>} : vector<32x224xbf16>, vector<224x128xbf16>, vector<32x128xf32> -> vector<32x128xf32>
    %c0_52 = arith.constant 0 : index
    %c0_53 = arith.constant 0 : index
    %193 = vector.load %arg7[%c0_52, %c0_53] : memref<32x1xf32, #tpu.memory_space<vmem>>, vector<32x1xf32>
    %194 = vector.broadcast %193 : vector<32x1xf32> to vector<32x128xf32>
    %195 = arith.addf %192, %194 : vector<32x128xf32>
    %196 = arith.addf %195, %107 : vector<32x128xf32>
    %cst_54 = arith.constant 0.000000e+00 : f32
    %197 = vector.broadcast %cst_54 : f32 to vector<32x128xf32>
    %198 = arith.maximumf %196, %197 : vector<32x128xf32>
    %c3_i32_55 = arith.constant 3 : i32
    %199 = tpu.dynamic_rotate %198 by %c3_i32_55 dim 1 : vector<32x128xf32>, i32 -> vector<32x128xf32>
    %cst_56 = arith.constant 0.000000e+00 : f32
    %200 = vector.shape_cast %21 : vector<1x128xi1> to vector<1x128xi1>
    %201 = vector.broadcast %200 : vector<1x128xi1> to vector<32x128xi1>
    %202 = vector.broadcast %cst_56 : f32 to vector<32x128xf32>
    %203 = arith.select %201, %199, %202 : vector<32x128xi1>, vector<32x128xf32>
    %c2_i32_57 = arith.constant 2 : i32
    %204 = tpu.dynamic_rotate %198 by %c2_i32_57 dim 1 : vector<32x128xf32>, i32 -> vector<32x128xf32>
    %cst_58 = arith.constant 0.000000e+00 : f32
    %205 = vector.shape_cast %26 : vector<1x128xi1> to vector<1x128xi1>
    %206 = vector.broadcast %205 : vector<1x128xi1> to vector<32x128xi1>
    %207 = vector.broadcast %cst_58 : f32 to vector<32x128xf32>
    %208 = arith.select %206, %204, %207 : vector<32x128xi1>, vector<32x128xf32>
    %c1_i32_59 = arith.constant 1 : i32
    %209 = tpu.dynamic_rotate %198 by %c1_i32_59 dim 1 : vector<32x128xf32>, i32 -> vector<32x128xf32>
    %cst_60 = arith.constant 0.000000e+00 : f32
    %210 = vector.shape_cast %31 : vector<1x128xi1> to vector<1x128xi1>
    %211 = vector.broadcast %210 : vector<1x128xi1> to vector<32x128xi1>
    %212 = vector.broadcast %cst_60 : f32 to vector<32x128xf32>
    %213 = arith.select %211, %209, %212 : vector<32x128xi1>, vector<32x128xf32>
    %c127_i32_61 = arith.constant 127 : i32
    %214 = tpu.dynamic_rotate %198 by %c127_i32_61 dim 1 : vector<32x128xf32>, i32 -> vector<32x128xf32>
    %cst_62 = arith.constant 0.000000e+00 : f32
    %215 = vector.shape_cast %36 : vector<1x128xi1> to vector<1x128xi1>
    %216 = vector.broadcast %215 : vector<1x128xi1> to vector<32x128xi1>
    %217 = vector.broadcast %cst_62 : f32 to vector<32x128xf32>
    %218 = arith.select %216, %214, %217 : vector<32x128xi1>, vector<32x128xf32>
    %c126_i32_63 = arith.constant 126 : i32
    %219 = tpu.dynamic_rotate %198 by %c126_i32_63 dim 1 : vector<32x128xf32>, i32 -> vector<32x128xf32>
    %cst_64 = arith.constant 0.000000e+00 : f32
    %220 = vector.shape_cast %41 : vector<1x128xi1> to vector<1x128xi1>
    %221 = vector.broadcast %220 : vector<1x128xi1> to vector<32x128xi1>
    %222 = vector.broadcast %cst_64 : f32 to vector<32x128xf32>
    %223 = arith.select %221, %219, %222 : vector<32x128xi1>, vector<32x128xf32>
    %c125_i32_65 = arith.constant 125 : i32
    %224 = tpu.dynamic_rotate %198 by %c125_i32_65 dim 1 : vector<32x128xf32>, i32 -> vector<32x128xf32>
    %cst_66 = arith.constant 0.000000e+00 : f32
    %225 = vector.shape_cast %46 : vector<1x128xi1> to vector<1x128xi1>
    %226 = vector.broadcast %225 : vector<1x128xi1> to vector<32x128xi1>
    %227 = vector.broadcast %cst_66 : f32 to vector<32x128xf32>
    %228 = arith.select %226, %224, %227 : vector<32x128xi1>, vector<32x128xf32>
    %229 = arith.truncf %203 : vector<32x128xf32> to vector<32x128xbf16>
    %230 = arith.truncf %208 : vector<32x128xf32> to vector<32x128xbf16>
    %231 = arith.truncf %213 : vector<32x128xf32> to vector<32x128xbf16>
    %232 = arith.truncf %198 : vector<32x128xf32> to vector<32x128xbf16>
    %233 = arith.truncf %218 : vector<32x128xf32> to vector<32x128xbf16>
    %234 = arith.truncf %223 : vector<32x128xf32> to vector<32x128xbf16>
    %235 = arith.truncf %228 : vector<32x128xf32> to vector<32x128xbf16>
    %236 = tpu.concatenate %229, %230, %231, %232, %233, %234, %235 in 0 : vector<32x128xbf16>, vector<32x128xbf16>, vector<32x128xbf16>, vector<32x128xbf16>, vector<32x128xbf16>, vector<32x128xbf16>, vector<32x128xbf16> -> vector<224x128xbf16>
    %c0_67 = arith.constant 0 : index
    %c0_68 = arith.constant 0 : index
    %237 = vector.load %arg8[%c0_67, %c0_68] : memref<32x224xbf16, #tpu.memory_space<vmem>>, vector<32x224xbf16>
    %cst_69 = arith.constant dense<0.000000e+00> : vector<32x128xf32>
    %238 = tpu.matmul %237, %236, %cst_69 {dimension_numbers = #tpu.dot_dimension_numbers<[1], [0], [0], [1], [0, 0, 1, 1], [], []>} : vector<32x224xbf16>, vector<224x128xbf16>, vector<32x128xf32> -> vector<32x128xf32>
    %c0_70 = arith.constant 0 : index
    %c0_71 = arith.constant 0 : index
    %239 = vector.load %arg9[%c0_70, %c0_71] : memref<32x1xf32, #tpu.memory_space<vmem>>, vector<32x1xf32>
    %240 = vector.broadcast %239 : vector<32x1xf32> to vector<32x128xf32>
    %241 = arith.addf %238, %240 : vector<32x128xf32>
    %cst_72 = arith.constant 0.000000e+00 : f32
    %242 = vector.broadcast %cst_72 : f32 to vector<32x128xf32>
    %243 = arith.maximumf %241, %242 : vector<32x128xf32>
    %c3_i32_73 = arith.constant 3 : i32
    %244 = tpu.dynamic_rotate %243 by %c3_i32_73 dim 1 : vector<32x128xf32>, i32 -> vector<32x128xf32>
    %cst_74 = arith.constant 0.000000e+00 : f32
    %245 = vector.shape_cast %21 : vector<1x128xi1> to vector<1x128xi1>
    %246 = vector.broadcast %245 : vector<1x128xi1> to vector<32x128xi1>
    %247 = vector.broadcast %cst_74 : f32 to vector<32x128xf32>
    %248 = arith.select %246, %244, %247 : vector<32x128xi1>, vector<32x128xf32>
    %c2_i32_75 = arith.constant 2 : i32
    %249 = tpu.dynamic_rotate %243 by %c2_i32_75 dim 1 : vector<32x128xf32>, i32 -> vector<32x128xf32>
    %cst_76 = arith.constant 0.000000e+00 : f32
    %250 = vector.shape_cast %26 : vector<1x128xi1> to vector<1x128xi1>
    %251 = vector.broadcast %250 : vector<1x128xi1> to vector<32x128xi1>
    %252 = vector.broadcast %cst_76 : f32 to vector<32x128xf32>
    %253 = arith.select %251, %249, %252 : vector<32x128xi1>, vector<32x128xf32>
    %c1_i32_77 = arith.constant 1 : i32
    %254 = tpu.dynamic_rotate %243 by %c1_i32_77 dim 1 : vector<32x128xf32>, i32 -> vector<32x128xf32>
    %cst_78 = arith.constant 0.000000e+00 : f32
    %255 = vector.shape_cast %31 : vector<1x128xi1> to vector<1x128xi1>
    %256 = vector.broadcast %255 : vector<1x128xi1> to vector<32x128xi1>
    %257 = vector.broadcast %cst_78 : f32 to vector<32x128xf32>
    %258 = arith.select %256, %254, %257 : vector<32x128xi1>, vector<32x128xf32>
    %c127_i32_79 = arith.constant 127 : i32
    %259 = tpu.dynamic_rotate %243 by %c127_i32_79 dim 1 : vector<32x128xf32>, i32 -> vector<32x128xf32>
    %cst_80 = arith.constant 0.000000e+00 : f32
    %260 = vector.shape_cast %36 : vector<1x128xi1> to vector<1x128xi1>
    %261 = vector.broadcast %260 : vector<1x128xi1> to vector<32x128xi1>
    %262 = vector.broadcast %cst_80 : f32 to vector<32x128xf32>
    %263 = arith.select %261, %259, %262 : vector<32x128xi1>, vector<32x128xf32>
    %c126_i32_81 = arith.constant 126 : i32
    %264 = tpu.dynamic_rotate %243 by %c126_i32_81 dim 1 : vector<32x128xf32>, i32 -> vector<32x128xf32>
    %cst_82 = arith.constant 0.000000e+00 : f32
    %265 = vector.shape_cast %41 : vector<1x128xi1> to vector<1x128xi1>
    %266 = vector.broadcast %265 : vector<1x128xi1> to vector<32x128xi1>
    %267 = vector.broadcast %cst_82 : f32 to vector<32x128xf32>
    %268 = arith.select %266, %264, %267 : vector<32x128xi1>, vector<32x128xf32>
    %c125_i32_83 = arith.constant 125 : i32
    %269 = tpu.dynamic_rotate %243 by %c125_i32_83 dim 1 : vector<32x128xf32>, i32 -> vector<32x128xf32>
    %cst_84 = arith.constant 0.000000e+00 : f32
    %270 = vector.shape_cast %46 : vector<1x128xi1> to vector<1x128xi1>
    %271 = vector.broadcast %270 : vector<1x128xi1> to vector<32x128xi1>
    %272 = vector.broadcast %cst_84 : f32 to vector<32x128xf32>
    %273 = arith.select %271, %269, %272 : vector<32x128xi1>, vector<32x128xf32>
    %274 = arith.truncf %248 : vector<32x128xf32> to vector<32x128xbf16>
    %275 = arith.truncf %253 : vector<32x128xf32> to vector<32x128xbf16>
    %276 = arith.truncf %258 : vector<32x128xf32> to vector<32x128xbf16>
    %277 = arith.truncf %243 : vector<32x128xf32> to vector<32x128xbf16>
    %278 = arith.truncf %263 : vector<32x128xf32> to vector<32x128xbf16>
    %279 = arith.truncf %268 : vector<32x128xf32> to vector<32x128xbf16>
    %280 = arith.truncf %273 : vector<32x128xf32> to vector<32x128xbf16>
    %281 = tpu.concatenate %274, %275, %276, %277, %278, %279, %280 in 0 : vector<32x128xbf16>, vector<32x128xbf16>, vector<32x128xbf16>, vector<32x128xbf16>, vector<32x128xbf16>, vector<32x128xbf16>, vector<32x128xbf16> -> vector<224x128xbf16>
    %c0_85 = arith.constant 0 : index
    %c0_86 = arith.constant 0 : index
    %282 = vector.load %arg10[%c0_85, %c0_86] : memref<32x224xbf16, #tpu.memory_space<vmem>>, vector<32x224xbf16>
    %cst_87 = arith.constant dense<0.000000e+00> : vector<32x128xf32>
    %283 = tpu.matmul %282, %281, %cst_87 {dimension_numbers = #tpu.dot_dimension_numbers<[1], [0], [0], [1], [0, 0, 1, 1], [], []>} : vector<32x224xbf16>, vector<224x128xbf16>, vector<32x128xf32> -> vector<32x128xf32>
    %c0_88 = arith.constant 0 : index
    %c0_89 = arith.constant 0 : index
    %284 = vector.load %arg11[%c0_88, %c0_89] : memref<32x1xf32, #tpu.memory_space<vmem>>, vector<32x1xf32>
    %285 = vector.broadcast %284 : vector<32x1xf32> to vector<32x128xf32>
    %286 = arith.addf %283, %285 : vector<32x128xf32>
    %287 = arith.addf %286, %198 : vector<32x128xf32>
    %cst_90 = arith.constant 0.000000e+00 : f32
    %288 = vector.broadcast %cst_90 : f32 to vector<32x128xf32>
    %289 = arith.maximumf %287, %288 : vector<32x128xf32>
    %c0_91 = arith.constant 0 : index
    %c0_92 = arith.constant 0 : index
    %290 = vector.load %arg14[%c0_91, %c0_92] : memref<128x2xf32, #tpu.memory_space<vmem>>, vector<128x2xf32>
    %cst_93 = arith.constant dense<0.000000e+00> : vector<32x2xf32>
    %291 = tpu.matmul %289, %290, %cst_93 {dimension_numbers = #tpu.dot_dimension_numbers<[1], [0], [0], [1], [0, 0, 1, 1], [], []>} : vector<32x128xf32>, vector<128x2xf32>, vector<32x2xf32> -> vector<32x2xf32>
    %c0_94 = arith.constant 0 : index
    %c0_95 = arith.constant 0 : index
    %292 = vector.load %arg12[%c0_94, %c0_95] : memref<4x32xf32, #tpu.memory_space<vmem>>, vector<4x32xf32>
    %cst_96 = arith.constant dense<0.000000e+00> : vector<4x2xf32>
    %293 = tpu.matmul %292, %291, %cst_96 {dimension_numbers = #tpu.dot_dimension_numbers<[1], [0], [0], [1], [0, 0, 1, 1], [], []>} : vector<4x32xf32>, vector<32x2xf32>, vector<4x2xf32> -> vector<4x2xf32>
    %c0_97 = arith.constant 0 : index
    %c0_98 = arith.constant 0 : index
    %294 = vector.load %arg13[%c0_97, %c0_98] : memref<4x1xf32, #tpu.memory_space<vmem>>, vector<4x1xf32>
    %295 = vector.broadcast %294 : vector<4x1xf32> to vector<4x2xf32>
    %296 = arith.addf %293, %295 : vector<4x2xf32>
    %297 = vector.shape_cast %296 : vector<4x2xf32> to vector<1x4x2xf32>
    %c0_99 = arith.constant 0 : index
    %c0_100 = arith.constant 0 : index
    %c0_101 = arith.constant 0 : index
    %298 = vector.load %arg15[%c0_99, %c0_100, %c0_101] : memref<1x4x2xf32, #tpu.memory_space<vmem>>, vector<1x4x2xf32>
    tpu.vector_store %arg15[%c0_99, %c0_100, %c0_101], %297 {strides = array<i32>} : memref<1x4x2xf32, #tpu.memory_space<vmem>>, vector<1x4x2xf32>,
    return
  }
  func.func @transform_0(%arg0: i32) -> (i32, i32) {
    %c0_i32 = arith.constant 0 : i32
    %c0_i32_0 = arith.constant 0 : i32
    return %arg0, %c0_i32 : i32, i32
  }
  func.func @transform_1(%arg0: i32) -> (i32, i32) {
    %c0_i32 = arith.constant 0 : i32
    %c0_i32_0 = arith.constant 0 : i32
    %c0_i32_1 = arith.constant 0 : i32
    return %c0_i32, %c0_i32_0 : i32, i32
  }
  func.func @transform_2(%arg0: i32) -> (i32, i32) {
    %c0_i32 = arith.constant 0 : i32
    %c0_i32_0 = arith.constant 0 : i32
    %c0_i32_1 = arith.constant 0 : i32
    return %c0_i32, %c0_i32_0 : i32, i32
  }
  func.func @transform_3(%arg0: i32) -> (i32, i32) {
    %c0_i32 = arith.constant 0 : i32
    %c0_i32_0 = arith.constant 0 : i32
    %c0_i32_1 = arith.constant 0 : i32
    return %c0_i32, %c0_i32_0 : i32, i32
  }
  func.func @transform_4(%arg0: i32) -> (i32, i32) {
    %c0_i32 = arith.constant 0 : i32
    %c0_i32_0 = arith.constant 0 : i32
    %c0_i32_1 = arith.constant 0 : i32
    return %c0_i32, %c0_i32_0 : i32, i32
  }
  func.func @transform_5(%arg0: i32) -> (i32, i32) {
    %c0_i32 = arith.constant 0 : i32
    %c0_i32_0 = arith.constant 0 : i32
    %c0_i32_1 = arith.constant 0 : i32
    return %c0_i32, %c0_i32_0 : i32, i32
  }
  func.func @transform_6(%arg0: i32) -> (i32, i32) {
    %c0_i32 = arith.constant 0 : i32
    %c0_i32_0 = arith.constant 0 : i32
    %c0_i32_1 = arith.constant 0 : i32
    return %c0_i32, %c0_i32_0 : i32, i32
  }
  func.func @transform_7(%arg0: i32) -> (i32, i32) {
    %c0_i32 = arith.constant 0 : i32
    %c0_i32_0 = arith.constant 0 : i32
    %c0_i32_1 = arith.constant 0 : i32
    return %c0_i32, %c0_i32_0 : i32, i32
  }
  func.func @transform_8(%arg0: i32) -> (i32, i32) {
    %c0_i32 = arith.constant 0 : i32
    %c0_i32_0 = arith.constant 0 : i32
    %c0_i32_1 = arith.constant 0 : i32
    return %c0_i32, %c0_i32_0 : i32, i32
  }
  func.func @transform_9(%arg0: i32) -> (i32, i32) {
    %c0_i32 = arith.constant 0 : i32
    %c0_i32_0 = arith.constant 0 : i32
    %c0_i32_1 = arith.constant 0 : i32
    return %c0_i32, %c0_i32_0 : i32, i32
  }
  func.func @transform_10(%arg0: i32) -> (i32, i32) {
    %c0_i32 = arith.constant 0 : i32
    %c0_i32_0 = arith.constant 0 : i32
    %c0_i32_1 = arith.constant 0 : i32
    return %c0_i32, %c0_i32_0 : i32, i32
  }
  func.func @transform_11(%arg0: i32) -> (i32, i32) {
    %c0_i32 = arith.constant 0 : i32
    %c0_i32_0 = arith.constant 0 : i32
    %c0_i32_1 = arith.constant 0 : i32
    return %c0_i32, %c0_i32_0 : i32, i32
  }
  func.func @transform_12(%arg0: i32) -> (i32, i32) {
    %c0_i32 = arith.constant 0 : i32
    %c0_i32_0 = arith.constant 0 : i32
    %c0_i32_1 = arith.constant 0 : i32
    return %c0_i32, %c0_i32_0 : i32, i32
  }
  func.func @transform_13(%arg0: i32) -> (i32, i32) {
    %c0_i32 = arith.constant 0 : i32
    %c0_i32_0 = arith.constant 0 : i32
    %c0_i32_1 = arith.constant 0 : i32
    return %c0_i32, %c0_i32_0 : i32, i32
  }
  func.func @transform_14(%arg0: i32) -> (i32, i32, i32) {
    %c0_i32 = arith.constant 0 : i32
    %c0_i32_0 = arith.constant 0 : i32
    %c0_i32_1 = arith.constant 0 : i32
    return %arg0, %c0_i32, %c0_i32_0 : i32, i32, i32
  }
}

</mosaic_0001>

<bundles_post_ra>
// kernel: resnet_ts_classifier.1
= control target key start
LH: loop header
LB: loop body
LE: loop exit
PB: predicated region body
PF: predicated region fallthrough
CT: control target
= control target key end

     0   :  { %v1937_v0 = vmov 0   ;;  %s1938_s17 = smov 1   ;;  %s1939_s18 = smov 3   ;;  %v1940_v3 = vmov 1   ;;  %v1942_v5 = vmov 2   ;;  %v1945_v8 = vmov 4   ;;  %s2600_s1 = inlined_call_operand.vmem [shape: f32[32,7], index: 1, kind: input, shape index: {}]   ;;  %s2601_s0 = inlined_call_operand.vmem [shape: f32[1,128], index: 0, kind: input, shape index: {}]   ;;  %s2602_s2 = inlined_call_operand.vmem [shape: f32[32,1], index: 2, kind: input, shape index: {}]   ;;  %s2603_s4 = inlined_call_operand.vmem [shape: f32[32,1], index: 4, kind: input, shape index: {}]   ;;  %s2604_s3 = inlined_call_operand.vmem [shape: bf16[32,224], index: 3, kind: input, shape index: {}]   ;;  %s2605_s6 = inlined_call_operand.vmem [shape: f32[32,1], index: 6, kind: input, shape index: {}]   ;;  %s2606_s5 = inlined_call_operand.vmem [shape: bf16[32,224], index: 5, kind: input, shape index: {}]   ;;  %s2607_s8 = inlined_call_operand.vmem [shape: f32[32,1], index: 8, kind: input, shape index: {}]   ;;  %s2608_s7 = inlined_call_operand.vmem [shape: bf16[32,224], index: 7, kind: input, shape index: {}]   ;;  %s2609_s10 = inlined_call_operand.vmem [shape: f32[32,1], index: 10, kind: input, shape index: {}]   ;;  %s2610_s12 = inlined_call_operand.vmem [shape: f32[4,1], index: 12, kind: input, shape index: {}]   ;;  %s2611_s13 = inlined_call_operand.vmem [shape: f32[128,2], index: 13, kind: input, shape index: {}]   ;;  %s2612_s9 = inlined_call_operand.vmem [shape: bf16[32,224], index: 9, kind: input, shape index: {}]   ;;  %s2613_s11 = inlined_call_operand.vmem [shape: f32[4,32], index: 11, kind: input, shape index: {}]   ;;  %s2614_s14 = inlined_call_operand.vmem [shape: f32[1,4,2], index: 14, kind: output, shape index: {}]  }
   0x1   :  { %1666 = vset.pattern.permute.xlu2 %v1937_v0  ;;  %v2029_v1 = vld [vmem:[%s2600_s1 + $0x18] sm:$0xff]  ;;  %v80_v2 = vld [vmem:[%s2601_s0] sm:$0x1]  ;;  %1665 = vset.pattern.permute.xlu1 %v1937_v0  ;;  %v83_v4 = vld [vmem:[%s2600_s1 + $0x10] sm:$0xff]  ;;  %s1941_s21 = smov 2   ;;  %s1943_s26 = smov 127   ;;  %v48_v14 = vlaneseq }
   0x2   :  { %120 = vperm.xlu2 %1666, %v2029_v1   ;;  %91 = vrot.lane.b32.xlu1 %v80_v2, %s1938_s17  ;;  %v82_v6 = vld [vmem:[%s2600_s1 + $0x8] sm:$0xff]  ;;  %v81_v7 = vld [vmem:[%s2600_s1] sm:$0xff]  ;;  %s1944_s27 = smov 126   ;;  %v1946_v9 = vmov 3   ;;  %v1947_v10 = vmov 5   ;;  %v1948_v11 = vmov 6  }
   0x3   :  { %85 = vrot.lane.b32.xlu0 %v80_v2, %s1939_s18  ;;  %s1949_s1 = smov 125   ;;  %v286_v12 = vld [vmem:[%s2602_s2 + $0x10] sm:$0xff]  ;;  %v49_v16 = vand.u32 127, %v48_v14  ;;  %v287_v18 = vld [vmem:[%s2602_s2 + $0x18] sm:$0xff]  ;;  %v284_v19 = vld [vmem:[%s2602_s2] sm:$0xff]  ;;  %vm558_vm6 = vcmask 785408  }
   0x4   :  { %1668 = vset.pattern.permute.xlu0 %v1940_v3  ;;  %v285_v27 = vld [vmem:[%s2602_s2 + $0x8] sm:$0xff]  ;;  %v1936_v56 = vld [vmem:[%s2601_s0] ss:$0 sm:$0xff]  ;;  %vm1501_vm7 = vcmask 261120   ;;  %vm1525_vm8 = vcmask 11264  }
   0x5   :  { %v2063_v17 = vand.u32 63, %v49_v16 }
   0x7   :  { %vm68_vm0 = vcmp.ge.s32.totalorder %v2063_v17, 1  ;;  %vm62_vm1 = vcmp.ge.s32.totalorder %v2063_v17, 3  ;;  %vm65_vm2 = vcmp.ge.s32.totalorder %v2063_v17, 2  ;;  %vm72_vm3 = vcmp.lt.s32.totalorder %v2063_v17, 63 }
   0x8   :  { %vm75_vm4 = vcmp.lt.s32.totalorder %v2063_v17, 62  ;;  %vm78_vm5 = vcmp.lt.s32.totalorder %v2063_v17, 61 }
   0xa   :  { %1667 = vset.pattern.permute.xlu2 %v1940_v3  ;;  %115 = vperm.xlu1 %1665, %v83_v4  }
   0xb   :  { %88 = vrot.lane.b32.xlu0 %v80_v2, %s1941_s21  ;;  %141 = vperm.xlu2 %1667, %v83_v4  }
  0x12   :  { %1669 = vset.pattern.permute.xlu1 %v1942_v5 }
  0x13   :  { %145 = vperm.xlu0 %1668, %v2029_v1   ;;  %1670 = vset.pattern.permute.xlu2 %v1942_v5 }
  0x14   :  { %166 = vperm.xlu1 %1669, %v83_v4   ;;  %170 = vperm.xlu2 %1670, %v2029_v1  }
  0x1b   :  { %1672 = vset.pattern.permute.xlu0 %v1937_v0 }
  0x1c   :  { %94 = vrot.lane.b32.xlu1 %v80_v2, %s1943_s26  ;;  %110 = vperm.xlu0 %1672, %v82_v6  }
  0x1d   :  { %1671 = vset.pattern.permute.xlu2 %v1937_v0  ;;  %1673 = vset.pattern.permute.xlu1 %v1940_v3 }
  0x1e   :  { %105 = vperm.xlu2 %1671, %v81_v7  }
  0x24   :  { %133 = vperm.xlu1 %1673, %v81_v7   ;;  %97 = vrot.lane.b32.xlu0 %v80_v2, %s1944_s27 }
  0x25   :  { %1679 = vset.pattern.permute.xlu0 %v1945_v8 }
  0x26   :  { %1674 = vset.pattern.permute.xlu2 %v1940_v3 }
  0x27   :  { %137 = vperm.xlu2 %1674, %v82_v6  }
  0x2c   :  { %1675 = vset.pattern.permute.xlu1 %v1946_v9  ;;  %218 = vperm.xlu0 %1679, %v83_v4  }
  0x2d   :  { %191 = vperm.xlu1 %1675, %v83_v4  }
  0x2f   :  { %1676 = vset.pattern.permute.xlu2 %v1946_v9 }
  0x30   :  { %195 = vperm.xlu2 %1676, %v2029_v1  }
  0x34   :  { %1683 = vset.pattern.permute.xlu0 %v1947_v10 }
  0x35   :  { %1677 = vset.pattern.permute.xlu1 %v1942_v5  ;;  %243 = vperm.xlu0 %1683, %v83_v4  }
  0x36   :  { %158 = vperm.xlu1 %1677, %v81_v7  }
  0x38   :  { %1678 = vset.pattern.permute.xlu2 %v1942_v5 }
  0x39   :  { %162 = vperm.xlu2 %1678, %v82_v6  }
  0x3d   :  { %1688 = vset.pattern.permute.xlu0 %v1948_v11 }
  0x3e   :  { %1680 = vset.pattern.permute.xlu1 %v1945_v8  ;;  %272 = vperm.xlu0 %1688, %v2029_v1  }
  0x3f   :  { %222 = vperm.xlu1 %1680, %v2029_v1  }
  0x41   :  { %100 = vrot.lane.b32.xlu2 %v80_v2, %s1949_s1 }
  0x42   :  { %1682 = vset.pattern.permute.xlu2 %v1946_v9 }
  0x46   :  { %1693 = vset.pattern.permute.xlu0 %v1937_v0 }
  0x47   :  { %1681 = vset.pattern.permute.xlu1 %v1946_v9  ;;  %300 = vperm.xlu0 %1693, %v286_v12  }
  0x48   :  { %183 = vperm.xlu1 %1681, %v81_v7  }
  0x49   :  { %187 = vperm.xlu2 %1682, %v82_v6  }
  0x50   :  { %1684 = vset.pattern.permute.xlu1 %v1947_v10 }
  0x51   :  { %1685 = vset.pattern.permute.xlu2 %v1945_v8  ;;  %247 = vperm.xlu1 %1684, %v2029_v1  }
  0x52   :  { %210 = vperm.xlu2 %1685, %v81_v7  }
  0x59   :  { %1686 = vset.pattern.permute.xlu1 %v1945_v8 }
  0x5a   :  { %1687 = vset.pattern.permute.xlu2 %v1948_v11  ;;  %214 = vperm.xlu1 %1686, %v82_v6  }
  0x5b   :  { %268 = vperm.xlu2 %1687, %v83_v4  }
  0x5c   :  { %v121_v13 = vpop.permute.xlu2 %120 }
  0x62   :  { %1689 = vset.pattern.permute.xlu1 %v1947_v10 }
  0x63   :  { %1690 = vset.pattern.permute.xlu2 %v1947_v10  ;;  %235 = vperm.xlu1 %1689, %v81_v7  }
  0x64   :  { %239 = vperm.xlu2 %1690, %v82_v6  }
  0x65   :  { %v142_v15 = vpop.permute.xlu2 %141 }
  0x6b   :  { %1691 = vset.pattern.permute.xlu1 %v1948_v11 }
  0x6c   :  { %1692 = vset.pattern.permute.xlu2 %v1948_v11  ;;  %260 = vperm.xlu1 %1691, %v81_v7  }
  0x6d   :  { %264 = vperm.xlu2 %1692, %v82_v6  }
  0x6e   :  { %v171_v20 = vpop.permute.xlu2 %170 }
  0x74   :  { %1694 = vset.pattern.permute.xlu1 %v1937_v0  ;;  %v92_v21 = vpop.permute.xlu1 %91 }
  0x75   :  { %305 = vperm.xlu1 %1694, %v287_v18   ;;  %v93_v22 = vsel %vm68_vm0, %v92_v21, 0.0  ;;  %v86_v23 = vpop.permute.xlu0 %85  ;;  %1695 = vset.pattern.permute.xlu2 %v1937_v0 }
  0x76   :  { %v2076_v24 = vperm.slane %v93_v22, 0  ;;  %290 = vperm.xlu2 %1695, %v284_v19   ;;  %v87_v26 = vsel %vm62_vm1, %v86_v23, 0.0 }
  0x77   :  { %v123_v29 = vperm.slane %v87_v26, 0 }
  0x78   :  { %v177_v25 = vmul.f32 %v2076_v24, %v171_v20  ;;  %v106_v31 = vpop.permute.xlu2 %105 }
  0x79   :  { %v127_v38 = vmul.f32 %v123_v29, %v121_v13  ;;  %v124_v49 = vmul.f32 %v123_v29, %v106_v31 }
  0x7c   :  { %v116_v28 = vpop.permute.xlu1 %115 }
  0x7d   :  { %295 = vperm.xlu1 %1694, %v285_v27   ;;  %v89_v30 = vpop.permute.xlu0 %88  ;;  %v126_v34 = vmul.f32 %v123_v29, %v116_v28 }
  0x7e   :  { %v90_v32 = vsel %vm65_vm2, %v89_v30, 0.0 }
  0x7f   :  { %v148_v33 = vperm.slane %v90_v32, 0 }
  0x81   :  { %v151_v35 = vmul.f32 %v148_v33, %v142_v15  ;;  %v138_v42 = vpop.permute.xlu2 %137 }
  0x82   :  { %v150_v16 = vmul.f32 %v148_v33, %v138_v42 }
  0x83   :  { %v155_v36 = vadd.f32 %v151_v35, %v126_v34 }
  0x85   :  { %v146_v37 = vpop.permute.xlu0 %145 }
  0x86   :  { %v152_v39 = vmul.f32 %v148_v33, %v146_v37  ;;  %v167_v40 = vpop.permute.xlu1 %166 }
  0x87   :  { %v176_v41 = vmul.f32 %v2076_v24, %v167_v40 }
  0x88   :  { %v156_v43 = vadd.f32 %v152_v39, %v127_v38 }
  0x89   :  { %v180_v44 = vadd.f32 %v176_v41, %v155_v36 }
  0x8a   :  { %v181_v45 = vadd.f32 %v177_v25, %v156_v43  ;;  %v196_v48 = vpop.permute.xlu2 %195 }
  0x8b   :  { %v204_v4 = vmul.f32 %v1936_v56, %v196_v48 }
  0x8d   :  { %v208_v7 = vadd.f32 %v204_v4, %v181_v45 }
  0x8e   :  { %v95_v46 = vpop.permute.xlu1 %94  ;;  %v111_v47 = vpop.permute.xlu0 %110 }
  0x8f   :  { %v96_v55 = vsel %vm72_vm3, %v95_v46, 0.0  ;;  %v125_v18 = vmul.f32 %v123_v29, %v111_v47 }
  0x90   :  { %v225_v59 = vperm.slane %v96_v55, 0 }
  0x91   :  { %v154_v20 = vadd.f32 %v150_v16, %v125_v18  ;;  %v518_v16 = vld [vmem:[%s2603_s4 + $0x10] sm:$0xff]  ;;  %v517_v18 = vld [vmem:[%s2603_s4 + $0x8] sm:$0xff] }
  0x93   :  { %v163_v54 = vpop.permute.xlu2 %162 }
  0x94   :  { %v175_v21 = vmul.f32 %v2076_v24, %v163_v54 }
  0x96   :  { %v134_v50 = vpop.permute.xlu1 %133  ;;  %v98_v51 = vpop.permute.xlu0 %97  ;;  %v179_v23 = vadd.f32 %v175_v21, %v154_v20 }
  0x97   :  { %v149_v52 = vmul.f32 %v148_v33, %v134_v50  ;;  %v99_v32 = vsel %vm75_vm4, %v98_v51, 0.0 }
  0x98   :  { %v250_v33 = vperm.slane %v99_v32, 0 }
  0x99   :  { %v153_v53 = vadd.f32 %v149_v52, %v124_v49 }
  0x9b   :  { %v101_v0 = vpop.permute.xlu2 %100 }
  0x9c   :  { %v102_v29 = vsel %vm78_vm5, %v101_v0, 0.0 }
  0x9d   :  { %v275_v36 = vperm.slane %v102_v29, 0 }
  0x9e   :  { %v219_v57 = vpop.permute.xlu0 %218 }
  0x9f   :  { %v192_v58 = vpop.permute.xlu1 %191  ;;  %v228_v61 = vmul.f32 %v225_v59, %v219_v57 }
  0xa0   :  { %v203_v60 = vmul.f32 %v1936_v56, %v192_v58 }
  0xa2   :  { %v207_v62 = vadd.f32 %v203_v60, %v180_v44 }
  0xa3   :  { %v188_v5 = vpop.permute.xlu2 %187 }
  0xa4   :  { %v232_v63 = vadd.f32 %v228_v61, %v207_v62  ;;  %v202_v22 = vmul.f32 %v1936_v56, %v188_v5 }
  0xa6   :  { %v206_v27 = vadd.f32 %v202_v22, %v179_v23 }
  0xa7   :  { %v244_v25 = vpop.permute.xlu0 %243 }
  0xa8   :  { %v159_v1 = vpop.permute.xlu1 %158  ;;  %v253_v37 = vmul.f32 %v250_v33, %v244_v25 }
  0xa9   :  { %v174_v2 = vmul.f32 %v2076_v24, %v159_v1 }
  0xaa   :  { %v257_v39 = vadd.f32 %v253_v37, %v232_v63 }
  0xab   :  { %v178_v3 = vadd.f32 %v174_v2, %v153_v53 }
  0xac   :  { %v211_v10 = vpop.permute.xlu2 %210 }
  0xad   :  { %v226_v13 = vmul.f32 %v225_v59, %v211_v10 }
  0xb0   :  { %v273_v24 = vpop.permute.xlu0 %272 }
  0xb1   :  { %v223_v6 = vpop.permute.xlu1 %222  ;;  %v279_v49 = vmul.f32 %v275_v36, %v273_v24 }
  0xb2   :  { %v229_v8 = vmul.f32 %v225_v59, %v223_v6 }
  0xb4   :  { %v233_v9 = vadd.f32 %v229_v8, %v208_v7 }
  0xb5   :  { %v269_v28 = vpop.permute.xlu2 %268 }
  0xb6   :  { %v278_v38 = vmul.f32 %v275_v36, %v269_v28 }
  0xb8   :  { %v282_v40 = vadd.f32 %v278_v38, %v257_v39 }
  0xb9   :  { %v301_v43 = vpop.permute.xlu0 %300 }
  0xba   :  { %v184_v11 = vpop.permute.xlu1 %183  ;;  %v310_v46 = vadd.f32 %v301_v43, %v282_v40 }
  0xbb   :  { %v201_v12 = vmul.f32 %v1936_v56, %v184_v11 }
  0xbc   :  { %v2103_v51 = vmax.f32 %v310_v46, 0.0 }
  0xbd   :  { %v205_v14 = vadd.f32 %v201_v12, %v178_v3 }
  0xbe   :  { %v240_v34 = vpop.permute.xlu2 %239  ;;  %v414_v61 = vpack.c.bf16 %v2103_v51, %v2103_v51 }
  0xbf   :  { %v230_v15 = vadd.f32 %v226_v13, %v205_v14  ;;  %v252_v52 = vmul.f32 %v250_v33, %v240_v34 }
  0xc0   :  { %v470_v3 = vunpack.c.l.b16 %v414_v61 }
  0xc3   :  { %v248_v19 = vpop.permute.xlu1 %247 }
  0xc4   :  { %v254_v41 = vmul.f32 %v250_v33, %v248_v19  ;;  %v516_v19 = vld [vmem:[%s2603_s4] sm:$0xff] }
  0xc6   :  { %v258_v47 = vadd.f32 %v254_v41, %v233_v9 }
  0xc7   :  { %v265_v44 = vpop.permute.xlu2 %264 }
  0xc8   :  { %v283_v54 = vadd.f32 %v279_v49, %v258_v47  ;;  %v277_v62 = vmul.f32 %v275_v36, %v265_v44 }
  0xcc   :  { %v215_v26 = vpop.permute.xlu1 %214 }
  0xcd   :  { %v227_v30 = vmul.f32 %v225_v59, %v215_v26 }
  0xcf   :  { %v231_v31 = vadd.f32 %v227_v30, %v206_v27 }
  0xd0   :  { %v291_v55 = vpop.permute.xlu2 %290 }
  0xd1   :  { %v256_v60 = vadd.f32 %v252_v52, %v231_v31 }
  0xd3   :  { %v281_v2 = vadd.f32 %v277_v62, %v256_v60 }
  0xd5   :  { %v236_v35 = vpop.permute.xlu1 %235 }
  0xd6   :  { %v251_v45 = vmul.f32 %v250_v33, %v236_v35 }
  0xd8   :  { %v255_v50 = vadd.f32 %v251_v45, %v230_v15  ;;  %v519_v15 = vld [vmem:[%s2603_s4 + $0x18] sm:$0xff] }
  0xde   :  { %v261_v42 = vpop.permute.xlu1 %260 }
  0xdf   :  { %v276_v48 = vmul.f32 %v275_v36, %v261_v42 }
  0xe1   :  { %v280_v53 = vadd.f32 %v276_v48, %v255_v50 }
  0xe3   :  { %v308_v58 = vadd.f32 %v291_v55, %v280_v53 }
  0xe5   :  { %v2113_v1 = vmax.f32 %v308_v58, 0.0 }
  0xe7   :  { %v306_v56 = vpop.permute.xlu1 %305  ;;  %v412_v9 = vpack.c.bf16 %v2113_v1, %v2113_v1 }
  0xe8   :  { %v311_v57 = vadd.f32 %v306_v56, %v283_v54 }
  0xe9   :  { %v468_v12 = vunpack.c.l.b16 %v412_v9 }
  0xea   :  { %v2105_v59 = vmax.f32 %v311_v57, 0.0 }
  0xec   :  { %v1701_v63 = vpack.i.bf16 %v2105_v59, %v2103_v51  ;;  %v415_v0 = vpack.c.bf16 %v2105_v59, %v2105_v59 }
  0xee   :  { %1702 = vrot.lane.b32.xlu0 %v1701_v63, %s1949_s1  ;;  %1697 = vrot.lane.b32.xlu2 %v1701_v63, %s1938_s17  ;;  %v471_v4 = vunpack.c.l.b16 %v415_v0 }
  0xef   :  { %v296_v5 = vpop.permute.xlu1 %295 }
  0xf0   :  { %v309_v6 = vadd.f32 %v296_v5, %v281_v2  ;;  %v473_v7 = vpack.c.b16 %v471_v4, %v470_v3 }
  0xf2   :  { %v2117_v8 = vmax.f32 %v309_v6, 0.0  ;;  %565 = vmatpush.bf16.msra.mxu0 %v473_v7 }
  0xf4   :  { %v1711_v10 = vpack.i.bf16 %v2117_v8, %v2113_v1  ;;  %v413_v11 = vpack.c.bf16 %v2117_v8, %v2117_v8 }
  0xf6   :  { %1717 = vrot.lane.b32.xlu0 %v1701_v63, %s1941_s21  ;;  %1712 = vrot.lane.b32.xlu2 %v1711_v10, %s1949_s1  ;;  %v469_v13 = vunpack.c.l.b16 %v413_v11 }
  0xf7   :  { %1707 = vrot.lane.b32.xlu1 %v1711_v10, %s1938_s17 }
  0xf8   :  { %v472_v14 = vpack.c.b16 %v469_v13, %v468_v12 }
  0xfa   :  { %566 = vmatpush.bf16.msra.mxu0 %v472_v14 }
  0xfe   :  { %1732 = vrot.lane.b32.xlu0 %v1711_v10, %s1944_s27  ;;  %1727 = vrot.lane.b32.xlu2 %v1711_v10, %s1941_s21 }
  0xff   :  { %1722 = vrot.lane.b32.xlu1 %v1701_v63, %s1944_s27 }
 0x106   :  { %1747 = vrot.lane.b32.xlu0 %v1711_v10, %s1939_s18  ;;  %1742 = vrot.lane.b32.xlu2 %v1701_v63, %s1943_s26 }
 0x107   :  { %1737 = vrot.lane.b32.xlu1 %v1701_v63, %s1939_s18 }
 0x10e   :  { %537 = vperm.xlu0 %1693, %v519_v15   ;;  %532 = vperm.xlu2 %1695, %v518_v16  }
 0x10f   :  { %1752 = vrot.lane.b32.xlu1 %v1711_v10, %s1943_s26 }
 0x116   :  { %527 = vperm.xlu2 %1695, %v517_v18  }
 0x117   :  { %522 = vperm.xlu1 %1694, %v516_v19  }
 0x148   :  { %v1698_v20 = vpop.permute.xlu2 %1697 }
 0x149   :  { %v1700_v21 = vunpack.i.h.bf16 %v1698_v20  ;;  %v1699_v22 = vunpack.i.l.bf16 %v1698_v20 }
 0x14b   :  { %v357_v23 = vsel %vm68_vm0, %v1700_v21, 0.0  ;;  %v356_v25 = vsel %vm68_vm0, %v1699_v22, 0.0 }
 0x14c   :  { %v410_v26 = vpack.c.bf16 %v356_v25, %v356_v25  ;;  %v411_v27 = vpack.c.bf16 %v357_v23, %v357_v23 }
 0x14e   :  { %v458_v28 = vunpack.c.l.b16 %v410_v26  ;;  %v459_v30 = vunpack.c.l.b16 %v411_v27 }
 0x150   :  { %v461_v31 = vpack.c.b16 %v459_v30, %v458_v28  ;;  %v1713_v32 = vpop.permute.xlu2 %1712 }
 0x151   :  { %v1715_v29 = vunpack.i.h.bf16 %v1713_v32  ;;  %v1714_v33 = vunpack.i.l.bf16 %v1713_v32 }
 0x152   :  { %567 = vmatpush.bf16.msra.mxu0 %v461_v31 }
 0x153   :  { %v397_v24 = vsel %vm78_vm5, %v1715_v29, 0.0  ;;  %v396_v34 = vsel %vm78_vm5, %v1714_v33, 0.0 }
 0x154   :  { %v424_v41 = vpack.c.bf16 %v396_v34, %v396_v34  ;;  %v425_v42 = vpack.c.bf16 %v397_v24, %v397_v24 }
 0x156   :  { %v504_v48 = vunpack.c.l.b16 %v424_v41  ;;  %v505_v49 = vunpack.c.l.b16 %v425_v42 }
 0x158   :  { %v1728_v38 = vpop.permute.xlu2 %1727  ;;  %v508_v63 = vpack.c.b16 %v505_v49, %v504_v48 }
 0x159   :  { %v1729_v47 = vunpack.i.l.bf16 %v1728_v38  ;;  %v1730_v50 = vunpack.i.h.bf16 %v1728_v38 }
 0x15b   :  { %v340_v60 = vsel %vm65_vm2, %v1729_v47, 0.0  ;;  %v341_v0 = vsel %vm65_vm2, %v1730_v50, 0.0 }
 0x15c   :  { %v404_v10 = vpack.c.bf16 %v340_v60, %v340_v60  ;;  %v405_v14 = vpack.c.bf16 %v341_v0, %v341_v0 }
 0x15e   :  { %v444_v27 = vunpack.c.l.b16 %v404_v10  ;;  %v445_v32 = vunpack.c.l.b16 %v405_v14  ;;  %v1605_v14 = vld [vmem:[%s2604_s3 + $0x4] sm:$0xf0] }
 0x160   :  { %v1703_v35 = vpop.permute.xlu0 %1702  ;;  %v1743_v2 = vpop.permute.xlu2 %1742  ;;  %v448_v49 = vpack.c.b16 %v445_v32, %v444_v27 }
 0x161   :  { %v1705_v36 = vunpack.i.h.bf16 %v1703_v35  ;;  %v1704_v37 = vunpack.i.l.bf16 %v1703_v35  ;;  %v1744_v11 = vunpack.i.l.bf16 %v1743_v2  ;;  %v1745_v15 = vunpack.i.h.bf16 %v1743_v2 }
 0x163   :  { %v398_v39 = vsel %vm78_vm5, %v1704_v37, 0.0  ;;  %v399_v40 = vsel %vm78_vm5, %v1705_v36, 0.0  ;;  %v370_v28 = vsel %vm72_vm3, %v1744_v11, 0.0  ;;  %v371_v35 = vsel %vm72_vm3, %v1745_v15, 0.0 }
 0x164   :  { %v426_v43 = vpack.c.bf16 %v398_v39, %v398_v39  ;;  %v427_v44 = vpack.c.bf16 %v399_v40, %v399_v40  ;;  %v418_v41 = vpack.c.bf16 %v370_v28, %v370_v28 }
 0x166   :  { %v506_v45 = vunpack.c.l.b16 %v426_v43  ;;  %v507_v46 = vunpack.c.l.b16 %v427_v44 }
 0x168   :  { %v1718_v52 = vpop.permute.xlu0 %1717  ;;  %v509_v53 = vpack.c.b16 %v507_v46, %v506_v45  ;;  %v419_v45 = vpack.c.bf16 %v371_v35, %v371_v35 }
 0x169   :  { %v1720_v54 = vunpack.i.h.bf16 %v1718_v52  ;;  %v1719_v55 = vunpack.i.l.bf16 %v1718_v52  ;;  %v1708_v56 = vpop.permute.xlu1 %1707 }
 0x16a   :  { %v1710_v57 = vunpack.i.h.bf16 %v1708_v56  ;;  %v1709_v58 = vunpack.i.l.bf16 %v1708_v56  ;;  %586 = vmatpush.bf16.msra.mxu1 %v509_v53  ;;  %v482_v56 = vunpack.c.l.b16 %v418_v41 }
 0x16b   :  { %v343_v61 = vsel %vm65_vm2, %v1720_v54, 0.0  ;;  %v342_v62 = vsel %vm65_vm2, %v1719_v55, 0.0 }
 0x16c   :  { %v355_v3 = vsel %vm68_vm0, %v1710_v57, 0.0  ;;  %v354_v4 = vsel %vm68_vm0, %v1709_v58, 0.0  ;;  %v406_v5 = vpack.c.bf16 %v342_v62, %v342_v62  ;;  %v407_v9 = vpack.c.bf16 %v343_v61, %v343_v61 }
 0x16d   :  { %v408_v6 = vpack.c.bf16 %v354_v4, %v354_v4  ;;  %v409_v7 = vpack.c.bf16 %v355_v3, %v355_v3  ;;  %v483_v61 = vunpack.c.l.b16 %v419_v45 }
 0x16e   :  { %587 = vmatpush.bf16.msra.mxu1 %v508_v63  ;;  %v446_v18 = vunpack.c.l.b16 %v406_v5  ;;  %v447_v23 = vunpack.c.l.b16 %v407_v9 }
 0x16f   :  { %v456_v12 = vunpack.c.l.b16 %v408_v6  ;;  %v457_v13 = vunpack.c.l.b16 %v409_v7  ;;  %v485_v7 = vpack.c.b16 %v483_v61, %v482_v56 }
 0x170   :  { %v1733_v16 = vpop.permute.xlu0 %1732  ;;  %v449_v36 = vpack.c.b16 %v447_v23, %v446_v18 }
 0x171   :  { %v1735_v19 = vunpack.i.h.bf16 %v1733_v16  ;;  %v1734_v20 = vunpack.i.l.bf16 %v1733_v16  ;;  %v1723_v21 = vpop.permute.xlu1 %1722  ;;  %v460_v22 = vpack.c.b16 %v457_v13, %v456_v12  ;;  %v1533_v13 = vld [vmem:[%s2604_s3] sm:$0xf] }
 0x172   :  { %v1725_v25 = vunpack.i.h.bf16 %v1723_v21  ;;  %v1724_v26 = vunpack.i.l.bf16 %v1723_v21  ;;  %v1534_v21 = vor.u32 %v1605_v14, %v1533_v13  ;;  %v796_v13 = vld [vmem:[%s2605_s6 + $0x8] sm:$0xff] }
 0x173   :  { %v383_v30 = vsel %vm75_vm4, %v1735_v19, 0.0  ;;  %v382_v31 = vsel %vm75_vm4, %v1734_v20, 0.0  ;;  %568 = vmatpush.bf16.msra.mxu0 %v460_v22 }
 0x174   :  { %v385_v29 = vsel %vm75_vm4, %v1725_v25, 0.0  ;;  %v384_v33 = vsel %vm75_vm4, %v1724_v26, 0.0  ;;  %v420_v24 = vpack.c.bf16 %v382_v31, %v382_v31  ;;  %v421_v34 = vpack.c.bf16 %v383_v30, %v383_v30  ;;  %v1604_v25 = vld [vmem:[%s2604_s3 + $0x4] sm:$0xf]  ;;  %v1535_v26 = vld [vmem:[%s2604_s3 + $0x8] sm:$0xf0] }
 0x175   :  { %v422_v37 = vpack.c.bf16 %v384_v33, %v384_v33  ;;  %v423_v38 = vpack.c.bf16 %v385_v29, %v385_v29  ;;  %v1538_v28 = vor.u32 %v1604_v25, %v1535_v26  ;;  %v1541_v30 = vld [vmem:[%s2604_s3 + $0x10] sm:$0xf]  ;;  %v1607_v31 = vld [vmem:[%s2604_s3 + $0x14] sm:$0xf0]  ;;  %v1606_v29 = vld [vmem:[%s2604_s3 + $0x14] sm:$0xf] }
 0x176   :  { %v492_v43 = vunpack.c.l.b16 %v420_v24  ;;  %v493_v44 = vunpack.c.l.b16 %v421_v34  ;;  %v1542_v32 = vor.u32 %v1607_v31, %v1541_v30  ;;  %v1543_v33 = vld [vmem:[%s2604_s3 + $0x18] sm:$0xf0]  ;;  %v533_v34 = vpop.permute.xlu2 %532 }
 0x177   :  { %569 = vmatpush.bf16.msra.mxu0 %v449_v36  ;;  %v494_v39 = vunpack.c.l.b16 %v422_v37  ;;  %v495_v40 = vunpack.c.l.b16 %v423_v38  ;;  %v1546_v24 = vor.u32 %v1606_v29, %v1543_v33 }
 0x178   :  { %v1748_v42 = vpop.permute.xlu0 %1747  ;;  %v496_v60 = vpack.c.b16 %v493_v44, %v492_v43 }
 0x179   :  { %v1750_v46 = vunpack.i.h.bf16 %v1748_v42  ;;  %v1749_v47 = vunpack.i.l.bf16 %v1748_v42  ;;  %v1738_v48 = vpop.permute.xlu1 %1737  ;;  %v497_v50 = vpack.c.b16 %v495_v40, %v494_v39 }
 0x17a   :  { %v1740_v52 = vunpack.i.h.bf16 %v1738_v48  ;;  %v1739_v53 = vunpack.i.l.bf16 %v1738_v48 }
 0x17b   :  { %v327_v54 = vsel %vm62_vm1, %v1750_v46, 0.0  ;;  %v326_v55 = vsel %vm62_vm1, %v1749_v47, 0.0  ;;  %570 = vmatpush.bf16.msra.mxu0 %v448_v49  ;;  %588 = vmatpush.bf16.msra.mxu1 %v497_v50 }
 0x17c   :  { %v329_v57 = vsel %vm62_vm1, %v1740_v52, 0.0  ;;  %v328_v58 = vsel %vm62_vm1, %v1739_v53, 0.0  ;;  %v400_v0 = vpack.c.bf16 %v326_v55, %v326_v55  ;;  %v401_v2 = vpack.c.bf16 %v327_v54, %v327_v54 }
 0x17d   :  { %v402_v62 = vpack.c.bf16 %v328_v58, %v328_v58  ;;  %v403_v63 = vpack.c.bf16 %v329_v57, %v329_v57 }
 0x17e   :  { %v432_v9 = vunpack.c.l.b16 %v400_v0  ;;  %v433_v10 = vunpack.c.l.b16 %v401_v2  ;;  %v528_v40 = vpop.permute.xlu2 %527 }
 0x17f   :  { %589 = vmatpush.bf16.msra.mxu1 %v496_v60  ;;  %v434_v3 = vunpack.c.l.b16 %v402_v62  ;;  %v435_v4 = vunpack.c.l.b16 %v403_v63 }
 0x180   :  { %v436_v18 = vpack.c.b16 %v433_v10, %v432_v9  ;;  %v538_v54 = vpop.permute.xlu0 %537  ;;  %v795_v10 = vld [vmem:[%s2605_s6] sm:$0xff] }
 0x181   :  { %v1753_v5 = vpop.permute.xlu1 %1752  ;;  %v437_v6 = vpack.c.b16 %v435_v4, %v434_v3 }
 0x182   :  { %v1755_v11 = vunpack.i.h.bf16 %v1753_v5  ;;  %v1754_v12 = vunpack.i.l.bf16 %v1753_v5 }
 0x183   :  { %571 = vmatpush.bf16.msra.mxu0 %v437_v6  ;;  %590 = vmatpush.bf16.msra.mxu1 %v485_v7 }
 0x184   :  { %v369_v15 = vsel %vm72_vm3, %v1755_v11, 0.0  ;;  %v368_v16 = vsel %vm72_vm3, %v1754_v12, 0.0  ;;  %v798_v11 = vld [vmem:[%s2605_s6 + $0x18] sm:$0xff]  ;;  %v797_v12 = vld [vmem:[%s2605_s6 + $0x10] sm:$0xff] }
 0x185   :  { %v416_v19 = vpack.c.bf16 %v368_v16, %v368_v16  ;;  %v417_v20 = vpack.c.bf16 %v369_v15, %v369_v15 }
 0x187   :  { %572 = vmatpush.bf16.msra.mxu0 %v436_v18  ;;  %v480_v22 = vunpack.c.l.b16 %v416_v19  ;;  %v481_v23 = vunpack.c.l.b16 %v417_v20 }
 0x189   :  { %v484_v27 = vpack.c.b16 %v481_v23, %v480_v22  ;;  %v523_v37 = vpop.permute.xlu1 %522 }
 0x18a   :  { %573 = vmatmul.bf16.vlgmr.msra.gmra.mxu0 %v1534_v21 }
 0x18b   :  { %591 = vmatpush.bf16.msra.mxu1 %v484_v27 }
 0x18e   :  { %1547 = vmatmul.msk.bf16.vlgmr.msra.gmra.mxu1 %vm558_vm6, %v1538_v28 }
 0x19a   :  { %578 = vmatmul.bf16.gmra.mxu0 %v1542_v32 }
 0x19e   :  { %1548 = vmatmul.msk.bf16.gmra.mxu1 %vm558_vm6, %v1546_v24 }
 0x207   :  { %v574_v35 = vpop.f32.mrf.mxu0 }
 0x208   :  { %v575_v39 = vadd.f32 %v574_v35, %v523_v37 }
 0x20b   :  { %v593_v36 = vpop.f32.mrf.mxu1 }
 0x20c   :  { %v594_v41 = vadd.f32 %v593_v36, %v575_v39 }
 0x20e   :  { %v603_v45 = vmax.f32 %v594_v41, 0.0 }
 0x20f   :  { %v576_v38 = vpop.f32.mrf.mxu0 }
 0x210   :  { %v577_v42 = vadd.f32 %v576_v38, %v528_v40  ;;  %v691_v4 = vpack.c.bf16 %v603_v45, %v603_v45 }
 0x212   :  { %v747_v7 = vunpack.c.l.b16 %v691_v4 }
 0x213   :  { %v595_v43 = vpop.f32.mrf.mxu1 }
 0x214   :  { %v596_v44 = vadd.f32 %v595_v43, %v577_v42 }
 0x216   :  { %v604_v46 = vmax.f32 %v596_v44, 0.0 }
 0x217   :  { %v579_v47 = vpop.f32.mrf.mxu0 }
 0x218   :  { %v1756_v48 = vpack.i.bf16 %v604_v46, %v603_v45  ;;  %v580_v50 = vadd.f32 %v579_v47, %v533_v34  ;;  %v692_v0 = vpack.c.bf16 %v604_v46, %v604_v46 }
 0x21a   :  { %1757 = vrot.lane.b32.xlu2 %v1756_v48, %s1938_s17  ;;  %v748_v6 = vunpack.c.l.b16 %v692_v0 }
 0x21b   :  { %v598_v49 = vpop.f32.mrf.mxu1 }
 0x21c   :  { %v599_v52 = vadd.f32 %v598_v49, %v580_v50  ;;  %v751_v9 = vpack.c.b16 %v748_v6, %v747_v7 }
 0x21e   :  { %v605_v55 = vmax.f32 %v599_v52, 0.0 }
 0x21f   :  { %v581_v53 = vpop.f32.mrf.mxu0 }
 0x220   :  { %v582_v56 = vadd.f32 %v581_v53, %v538_v54  ;;  %v693_v61 = vpack.c.bf16 %v605_v55, %v605_v55 }
 0x222   :  { %v749_v2 = vunpack.c.l.b16 %v693_v61 }
 0x223   :  { %v600_v57 = vpop.f32.mrf.mxu1 }
 0x224   :  { %v601_v58 = vadd.f32 %v600_v57, %v582_v56 }
 0x226   :  { %v606_v60 = vmax.f32 %v601_v58, 0.0 }
 0x228   :  { %v1776_v62 = vpack.i.bf16 %v606_v60, %v605_v55  ;;  %v694_v63 = vpack.c.bf16 %v606_v60, %v606_v60 }
 0x22a   :  { %1777 = vrot.lane.b32.xlu1 %v1776_v62, %s1949_s1  ;;  %1762 = vrot.lane.b32.xlu0 %v1776_v62, %s1938_s17  ;;  %v750_v3 = vunpack.c.l.b16 %v694_v63 }
 0x22b   :  { %1792 = vrot.lane.b32.xlu2 %v1776_v62, %s1944_s27 }
 0x22c   :  { %v752_v5 = vpack.c.b16 %v750_v3, %v749_v2 }
 0x22e   :  { %843 = vmatpush.bf16.msra.mxu2 %v752_v5 }
 0x232   :  { %1782 = vrot.lane.b32.xlu1 %v1776_v62, %s1941_s21  ;;  %1767 = vrot.lane.b32.xlu0 %v1756_v48, %s1949_s1 }
 0x233   :  { %1797 = vrot.lane.b32.xlu2 %v1776_v62, %s1939_s18  ;;  %844 = vmatpush.bf16.msra.mxu2 %v751_v9 }
 0x23a   :  { %1787 = vrot.lane.b32.xlu1 %v1756_v48, %s1944_s27  ;;  %1772 = vrot.lane.b32.xlu0 %v1756_v48, %s1941_s21 }
 0x23b   :  { %1812 = vrot.lane.b32.xlu2 %v1756_v48, %s1943_s26 }
 0x242   :  { %1807 = vrot.lane.b32.xlu1 %v1756_v48, %s1939_s18  ;;  %1802 = vrot.lane.b32.xlu0 %v1776_v62, %s1943_s26 }
 0x243   :  { %801 = vperm.xlu2 %1695, %v795_v10  }
 0x24a   :  { %816 = vperm.xlu1 %1694, %v798_v11   ;;  %811 = vperm.xlu0 %1693, %v797_v12  }
 0x252   :  { %806 = vperm.xlu0 %1693, %v796_v13  }
 0x274   :  { %v1758_v14 = vpop.permute.xlu2 %1757 }
 0x275   :  { %v1760_v15 = vunpack.i.h.bf16 %v1758_v14  ;;  %v1759_v16 = vunpack.i.l.bf16 %v1758_v14 }
 0x277   :  { %v640_v19 = vsel %vm68_vm0, %v1760_v15, 0.0  ;;  %v639_v20 = vsel %vm68_vm0, %v1759_v16, 0.0 }
 0x278   :  { %v687_v26 = vpack.c.bf16 %v639_v20, %v639_v20  ;;  %v688_v27 = vpack.c.bf16 %v640_v19, %v640_v19 }
 0x27a   :  { %v735_v42 = vunpack.c.l.b16 %v687_v26  ;;  %v736_v43 = vunpack.c.l.b16 %v688_v27 }
 0x27c   :  { %v739_v62 = vpack.c.b16 %v736_v43, %v735_v42 }
 0x285   :  { %v1793_v18 = vpop.permute.xlu2 %1792 }
 0x286   :  { %v1795_v21 = vunpack.i.h.bf16 %v1793_v18  ;;  %v1794_v22 = vunpack.i.l.bf16 %v1793_v18 }
 0x288   :  { %v666_v29 = vsel %vm75_vm4, %v1795_v21, 0.0  ;;  %v665_v33 = vsel %vm75_vm4, %v1794_v22, 0.0 }
 0x289   :  { %v701_v48 = vpack.c.bf16 %v665_v33, %v665_v33  ;;  %v702_v49 = vpack.c.bf16 %v666_v29, %v666_v29 }
 0x28b   :  { %v773_v11 = vunpack.c.l.b16 %v701_v48  ;;  %v774_v12 = vunpack.c.l.b16 %v702_v49 }
 0x28d   :  { %v1798_v41 = vpop.permute.xlu2 %1797  ;;  %v776_v29 = vpack.c.b16 %v774_v12, %v773_v11  ;;  %v1551_v11 = vld [vmem:[%s2606_s5] sm:$0xf]  ;;  %v1609_v12 = vld [vmem:[%s2606_s5 + $0x4] sm:$0xf0] }
 0x28e   :  { %v1800_v50 = vunpack.i.h.bf16 %v1798_v41  ;;  %v1799_v52 = vunpack.i.l.bf16 %v1798_v41 }
 0x290   :  { %v618_v9 = vsel %vm62_vm1, %v1800_v50, 0.0  ;;  %v617_v10 = vsel %vm62_vm1, %v1799_v52, 0.0 }
 0x295   :  { %v1813_v18 = vpop.permute.xlu2 %1812 }
 0x29c   :  { %v1778_v23 = vpop.permute.xlu1 %1777  ;;  %v1763_v25 = vpop.permute.xlu0 %1762 }
 0x29d   :  { %v1780_v28 = vunpack.i.h.bf16 %v1778_v23  ;;  %v1779_v30 = vunpack.i.l.bf16 %v1778_v23  ;;  %v1765_v31 = vunpack.i.h.bf16 %v1763_v25  ;;  %v1764_v32 = vunpack.i.l.bf16 %v1763_v25 }
 0x29e   :  { %v681_v23 = vpack.c.bf16 %v617_v10, %v617_v10  ;;  %v682_v25 = vpack.c.bf16 %v618_v9, %v618_v9 }
 0x29f   :  { %v642_v24 = vsel %vm68_vm0, %v1765_v31, 0.0  ;;  %v641_v34 = vsel %vm68_vm0, %v1764_v32, 0.0  ;;  %v677_v35 = vsel %vm78_vm5, %v1779_v30, 0.0  ;;  %v678_v36 = vsel %vm78_vm5, %v1780_v28, 0.0 }
 0x2a0   :  { %v689_v37 = vpack.c.bf16 %v641_v34, %v641_v34  ;;  %v690_v38 = vpack.c.bf16 %v642_v24, %v642_v24  ;;  %v705_v39 = vpack.c.bf16 %v677_v35, %v677_v35  ;;  %v706_v40 = vpack.c.bf16 %v678_v36, %v678_v36 }
 0x2a1   :  { %v1815_v31 = vunpack.i.h.bf16 %v1813_v18  ;;  %v1814_v32 = vunpack.i.l.bf16 %v1813_v18  ;;  %v714_v41 = vunpack.c.l.b16 %v682_v25  ;;  %v1552_v18 = vor.u32 %v1609_v12, %v1551_v11  ;;  %v1611_v25 = vld [vmem:[%s2606_s5 + $0x14] sm:$0xf0] }
 0x2a2   :  { %v737_v44 = vunpack.c.l.b16 %v689_v37  ;;  %v738_v45 = vunpack.c.l.b16 %v690_v38  ;;  %v785_v46 = vunpack.c.l.b16 %v705_v39  ;;  %v786_v47 = vunpack.c.l.b16 %v706_v40 }
 0x2a3   :  { %v713_v40 = vunpack.c.l.b16 %v681_v23  ;;  %v1559_v23 = vld [vmem:[%s2606_s5 + $0x10] sm:$0xf] }
 0x2a4   :  { %v1783_v53 = vpop.permute.xlu1 %1782  ;;  %v1768_v54 = vpop.permute.xlu0 %1767  ;;  %v740_v55 = vpack.c.b16 %v738_v45, %v737_v44  ;;  %v788_v56 = vpack.c.b16 %v786_v47, %v785_v46  ;;  %v652_v46 = vsel %vm72_vm3, %v1815_v31, 0.0  ;;  %v651_v47 = vsel %vm72_vm3, %v1814_v32, 0.0 }
 0x2a5   :  { %v1785_v57 = vunpack.i.h.bf16 %v1783_v53  ;;  %v1784_v58 = vunpack.i.l.bf16 %v1783_v53  ;;  %v1770_v60 = vunpack.i.h.bf16 %v1768_v54  ;;  %v1769_v61 = vunpack.i.l.bf16 %v1768_v54 }
 0x2a6   :  { %845 = vmatpush.bf16.msra.mxu2 %v740_v55  ;;  %864 = vmatpush.bf16.msra.mxu3 %v788_v56 }
 0x2a7   :  { %v630_v63 = vsel %vm65_vm2, %v1785_v57, 0.0  ;;  %v629_v0 = vsel %vm65_vm2, %v1784_v58, 0.0  ;;  %v676_v2 = vsel %vm78_vm5, %v1770_v60, 0.0  ;;  %v675_v3 = vsel %vm78_vm5, %v1769_v61, 0.0 }
 0x2a8   :  { %v685_v4 = vpack.c.bf16 %v629_v0, %v629_v0  ;;  %v686_v5 = vpack.c.bf16 %v630_v63, %v630_v63  ;;  %v703_v6 = vpack.c.bf16 %v675_v3, %v675_v3  ;;  %v704_v7 = vpack.c.bf16 %v676_v2, %v676_v2 }
 0x2a9   :  { %v716_v57 = vpack.c.b16 %v714_v41, %v713_v40  ;;  %v695_v58 = vpack.c.bf16 %v651_v47, %v651_v47  ;;  %v696_v60 = vpack.c.bf16 %v652_v46, %v652_v46 }
 0x2aa   :  { %846 = vmatpush.bf16.msra.mxu2 %v739_v62  ;;  %v725_v13 = vunpack.c.l.b16 %v685_v4  ;;  %v726_v14 = vunpack.c.l.b16 %v686_v5  ;;  %v783_v15 = vunpack.c.l.b16 %v703_v6  ;;  %v784_v16 = vunpack.c.l.b16 %v704_v7 }
 0x2ac   :  { %v1788_v19 = vpop.permute.xlu1 %1787  ;;  %v1773_v20 = vpop.permute.xlu0 %1772  ;;  %v728_v21 = vpack.c.b16 %v726_v14, %v725_v13  ;;  %v787_v22 = vpack.c.b16 %v784_v16, %v783_v15  ;;  %v759_v15 = vunpack.c.l.b16 %v695_v58  ;;  %v760_v16 = vunpack.c.l.b16 %v696_v60 }
 0x2ad   :  { %v1790_v26 = vunpack.i.h.bf16 %v1788_v19  ;;  %v1789_v27 = vunpack.i.l.bf16 %v1788_v19  ;;  %v1775_v28 = vunpack.i.h.bf16 %v1773_v20  ;;  %v1774_v30 = vunpack.i.l.bf16 %v1773_v20  ;;  %v1608_v19 = vld [vmem:[%s2606_s5 + $0x4] sm:$0xf]  ;;  %v1553_v20 = vld [vmem:[%s2606_s5 + $0x8] sm:$0xf0] }
 0x2ae   :  { %847 = vmatpush.bf16.msra.mxu2 %v728_v21  ;;  %865 = vmatpush.bf16.msra.mxu3 %v787_v22  ;;  %v763_v21 = vpack.c.b16 %v760_v16, %v759_v15  ;;  %v1556_v22 = vor.u32 %v1608_v19, %v1553_v20 }
 0x2af   :  { %v664_v33 = vsel %vm75_vm4, %v1790_v26, 0.0  ;;  %v663_v24 = vsel %vm75_vm4, %v1789_v27, 0.0  ;;  %v628_v34 = vsel %vm65_vm2, %v1775_v28, 0.0  ;;  %v627_v35 = vsel %vm65_vm2, %v1774_v30, 0.0  ;;  %v1610_v27 = vld [vmem:[%s2606_s5 + $0x14] sm:$0xf] }
 0x2b0   :  { %v683_v36 = vpack.c.bf16 %v627_v35, %v627_v35  ;;  %v684_v37 = vpack.c.bf16 %v628_v34, %v628_v34  ;;  %v699_v38 = vpack.c.bf16 %v663_v24, %v663_v24  ;;  %v700_v39 = vpack.c.bf16 %v664_v33, %v664_v33  ;;  %v1561_v28 = vld [vmem:[%s2606_s5 + $0x18] sm:$0xf0]  ;;  %v802_v33 = vpop.permute.xlu2 %801 }
 0x2b1   :  { %v1560_v26 = vor.u32 %v1611_v25, %v1559_v23  ;;  %v1564_v30 = vor.u32 %v1610_v27, %v1561_v28 }
 0x2b2   :  { %866 = vmatpush.bf16.msra.mxu3 %v776_v29  ;;  %v723_v42 = vunpack.c.l.b16 %v683_v36  ;;  %v724_v43 = vunpack.c.l.b16 %v684_v37  ;;  %v771_v44 = vunpack.c.l.b16 %v699_v38  ;;  %v772_v45 = vunpack.c.l.b16 %v700_v39 }
 0x2b4   :  { %v1808_v48 = vpop.permute.xlu1 %1807  ;;  %v1803_v49 = vpop.permute.xlu0 %1802  ;;  %v727_v50 = vpack.c.b16 %v724_v43, %v723_v42  ;;  %v775_v52 = vpack.c.b16 %v772_v45, %v771_v44 }
 0x2b5   :  { %v1810_v53 = vunpack.i.h.bf16 %v1808_v48  ;;  %v1809_v54 = vunpack.i.l.bf16 %v1808_v48  ;;  %v1805_v55 = vunpack.i.h.bf16 %v1803_v49  ;;  %v1804_v56 = vunpack.i.l.bf16 %v1803_v49 }
 0x2b6   :  { %848 = vmatpush.bf16.msra.mxu2 %v727_v50  ;;  %867 = vmatpush.bf16.msra.mxu3 %v775_v52 }
 0x2b7   :  { %v616_v61 = vsel %vm62_vm1, %v1810_v53, 0.0  ;;  %v615_v62 = vsel %vm62_vm1, %v1809_v54, 0.0  ;;  %v654_v63 = vsel %vm72_vm3, %v1805_v55, 0.0  ;;  %v653_v0 = vsel %vm72_vm3, %v1804_v56, 0.0 }
 0x2b8   :  { %v679_v2 = vpack.c.bf16 %v615_v62, %v615_v62  ;;  %v680_v3 = vpack.c.bf16 %v616_v61, %v616_v61  ;;  %v697_v4 = vpack.c.bf16 %v653_v0, %v653_v0  ;;  %v698_v5 = vpack.c.bf16 %v654_v63, %v654_v63 }
 0x2ba   :  { %849 = vmatpush.bf16.msra.mxu2 %v716_v57  ;;  %v711_v6 = vunpack.c.l.b16 %v679_v2  ;;  %v712_v7 = vunpack.c.l.b16 %v680_v3  ;;  %v761_v9 = vunpack.c.l.b16 %v697_v4  ;;  %v762_v10 = vunpack.c.l.b16 %v698_v5  ;;  %v1077_v4 = vld [vmem:[%s2607_s8] sm:$0xff]  ;;  %v1080_v5 = vld [vmem:[%s2607_s8 + $0x18] sm:$0xff] }
 0x2bc   :  { %v715_v13 = vpack.c.b16 %v712_v7, %v711_v6  ;;  %v764_v14 = vpack.c.b16 %v762_v10, %v761_v9  ;;  %v812_v31 = vpop.permute.xlu0 %811  ;;  %v1079_v6 = vld [vmem:[%s2607_s8 + $0x10] sm:$0xff]  ;;  %v1078_v7 = vld [vmem:[%s2607_s8 + $0x8] sm:$0xff] }
 0x2be   :  { %850 = vmatpush.bf16.msra.mxu2 %v715_v13  ;;  %868 = vmatpush.bf16.msra.mxu3 %v764_v14 }
 0x2c1   :  { %851 = vmatmul.bf16.vlgmr.msra.gmra.mxu2 %v1552_v18 }
 0x2c2   :  { %869 = vmatpush.bf16.msra.mxu3 %v763_v21 }
 0x2c4   :  { %v807_v36 = vpop.permute.xlu0 %806 }
 0x2c5   :  { %1565 = vmatmul.msk.bf16.vlgmr.msra.gmra.mxu3 %vm558_vm6, %v1556_v22 }
 0x2d1   :  { %856 = vmatmul.bf16.gmra.mxu2 %v1560_v26 }
 0x2d5   :  { %1566 = vmatmul.msk.bf16.gmra.mxu3 %vm558_vm6, %v1564_v30 }
 0x344   :  { %v852_v32 = vpop.f32.mrf.mxu2 }
 0x345   :  { %v853_v24 = vadd.f32 %v852_v32, %v802_v33 }
 0x348   :  { %v871_v29 = vpop.f32.mrf.mxu3 }
 0x349   :  { %v872_v35 = vadd.f32 %v871_v29, %v853_v24 }
 0x34b   :  { %v881_v39 = vadd.f32 %v872_v35, %v2113_v1  ;;  %v817_v1 = vpop.permute.xlu1 %816 }
 0x34c   :  { %v854_v34 = vpop.f32.mrf.mxu2 }
 0x34d   :  { %v855_v37 = vadd.f32 %v854_v34, %v807_v36  ;;  %v2321_v43 = vmax.f32 %v881_v39, 0.0 }
 0x34f   :  { %v973_v62 = vpack.c.bf16 %v2321_v43, %v2321_v43 }
 0x350   :  { %v873_v38 = vpop.f32.mrf.mxu3 }
 0x351   :  { %v874_v40 = vadd.f32 %v873_v38, %v855_v37  ;;  %v1029_v2 = vunpack.c.l.b16 %v973_v62 }
 0x353   :  { %v882_v41 = vadd.f32 %v874_v40, %v2117_v8 }
 0x354   :  { %v857_v42 = vpop.f32.mrf.mxu2 }
 0x355   :  { %v2323_v44 = vmax.f32 %v882_v41, 0.0  ;;  %v858_v45 = vadd.f32 %v857_v42, %v812_v31 }
 0x357   :  { %v1816_v46 = vpack.i.bf16 %v2323_v44, %v2321_v43 }
 0x358   :  { %v876_v47 = vpop.f32.mrf.mxu3 }
 0x359   :  { %v877_v48 = vadd.f32 %v876_v47, %v858_v45  ;;  %1817 = vrot.lane.b32.xlu0 %v1816_v46, %s1949_s1 }
 0x35b   :  { %v883_v50 = vadd.f32 %v877_v48, %v2103_v51  ;;  %v974_v51 = vpack.c.bf16 %v2323_v44, %v2323_v44 }
 0x35c   :  { %v859_v49 = vpop.f32.mrf.mxu2 }
 0x35d   :  { %v860_v52 = vadd.f32 %v859_v49, %v817_v1  ;;  %v2329_v8 = vmax.f32 %v883_v50, 0.0  ;;  %v1030_v0 = vunpack.c.l.b16 %v974_v51 }
 0x35f   :  { %v975_v57 = vpack.c.bf16 %v2329_v8, %v2329_v8  ;;  %v1033_v3 = vpack.c.b16 %v1030_v0, %v1029_v2 }
 0x360   :  { %v878_v53 = vpop.f32.mrf.mxu3 }
 0x361   :  { %v879_v54 = vadd.f32 %v878_v53, %v860_v52  ;;  %v1031_v61 = vunpack.c.l.b16 %v975_v57 }
 0x363   :  { %v884_v55 = vadd.f32 %v879_v54, %v2105_v59 }
 0x365   :  { %v2332_v56 = vmax.f32 %v884_v55, 0.0 }
 0x367   :  { %v1836_v58 = vpack.i.bf16 %v2332_v56, %v2329_v8  ;;  %v976_v60 = vpack.c.bf16 %v2332_v56, %v2332_v56 }
 0x369   :  { %1837 = vrot.lane.b32.xlu2 %v1836_v58, %s1938_s17  ;;  %1822 = vrot.lane.b32.xlu1 %v1836_v58, %s1949_s1  ;;  %v1032_v59 = vunpack.c.l.b16 %v976_v60 }
 0x36a   :  { %1852 = vrot.lane.b32.xlu0 %v1836_v58, %s1941_s21 }
 0x36b   :  { %v1034_v63 = vpack.c.b16 %v1032_v59, %v1031_v61 }
 0x36d   :  { %1125 = vmatpush.bf16.msrb.mxu1 %v1034_v63 }
 0x371   :  { %1842 = vrot.lane.b32.xlu2 %v1836_v58, %s1944_s27  ;;  %1827 = vrot.lane.b32.xlu1 %v1816_v46, %s1938_s17 }
 0x372   :  { %1857 = vrot.lane.b32.xlu0 %v1836_v58, %s1943_s26  ;;  %1126 = vmatpush.bf16.msrb.mxu1 %v1033_v3 }
 0x379   :  { %1847 = vrot.lane.b32.xlu2 %v1816_v46, %s1941_s21  ;;  %1832 = vrot.lane.b32.xlu1 %v1816_v46, %s1944_s27 }
 0x37a   :  { %1872 = vrot.lane.b32.xlu0 %v1816_v46, %s1939_s18 }
 0x381   :  { %1867 = vrot.lane.b32.xlu2 %v1816_v46, %s1943_s26  ;;  %1862 = vrot.lane.b32.xlu1 %v1836_v58, %s1939_s18 }
 0x382   :  { %1083 = vperm.xlu0 %1693, %v1077_v4  }
 0x389   :  { %1098 = vperm.xlu2 %1695, %v1080_v5   ;;  %1093 = vperm.xlu1 %1694, %v1079_v6  }
 0x391   :  { %1088 = vperm.xlu1 %1694, %v1078_v7  }
 0x3c3   :  { %v1838_v9 = vpop.permute.xlu2 %1837 }
 0x3c4   :  { %v1840_v10 = vunpack.i.h.bf16 %v1838_v9  ;;  %v1839_v11 = vunpack.i.l.bf16 %v1838_v9 }
 0x3c6   :  { %v924_v12 = vsel %vm68_vm0, %v1840_v10, 0.0  ;;  %v923_v13 = vsel %vm68_vm0, %v1839_v11, 0.0 }
 0x3c7   :  { %v971_v14 = vpack.c.bf16 %v923_v13, %v923_v13  ;;  %v972_v15 = vpack.c.bf16 %v924_v12, %v924_v12 }
 0x3c9   :  { %v1019_v16 = vunpack.c.l.b16 %v971_v14  ;;  %v1020_v18 = vunpack.c.l.b16 %v972_v15 }
 0x3cb   :  { %v1022_v19 = vpack.c.b16 %v1020_v18, %v1019_v16  ;;  %v1843_v20 = vpop.permute.xlu2 %1842  ;;  %v1818_v21 = vpop.permute.xlu0 %1817 }
 0x3cc   :  { %v1820_v22 = vunpack.i.h.bf16 %v1818_v21  ;;  %v1819_v23 = vunpack.i.l.bf16 %v1818_v21  ;;  %v1845_v25 = vunpack.i.h.bf16 %v1843_v20  ;;  %v1844_v26 = vunpack.i.l.bf16 %v1843_v20 }
 0x3cd   :  { %1127 = vmatpush.bf16.msrb.mxu1 %v1022_v19 }
 0x3ce   :  { %v958_v27 = vsel %vm78_vm5, %v1820_v22, 0.0  ;;  %v957_v28 = vsel %vm78_vm5, %v1819_v23, 0.0  ;;  %v948_v35 = vsel %vm75_vm4, %v1845_v25, 0.0  ;;  %v947_v36 = vsel %vm75_vm4, %v1844_v26, 0.0 }
 0x3cf   :  { %v985_v24 = vpack.c.bf16 %v957_v28, %v957_v28  ;;  %v986_v34 = vpack.c.bf16 %v958_v27, %v958_v27  ;;  %v983_v47 = vpack.c.bf16 %v947_v36, %v947_v36  ;;  %v984_v48 = vpack.c.bf16 %v948_v35, %v948_v35 }
 0x3d1   :  { %v1065_v45 = vunpack.c.l.b16 %v985_v24  ;;  %v1066_v46 = vunpack.c.l.b16 %v986_v34  ;;  %v1055_v61 = vunpack.c.l.b16 %v983_v47  ;;  %v1056_v0 = vunpack.c.l.b16 %v984_v48 }
 0x3d3   :  { %v1848_v31 = vpop.permute.xlu2 %1847  ;;  %v1069_v63 = vpack.c.b16 %v1066_v46, %v1065_v45  ;;  %v1058_v19 = vpack.c.b16 %v1056_v0, %v1055_v61 }
 0x3d4   :  { %v1850_v49 = vunpack.i.h.bf16 %v1848_v31  ;;  %v1849_v50 = vunpack.i.l.bf16 %v1848_v31 }
 0x3d6   :  { %v910_v59 = vsel %vm65_vm2, %v1850_v49, 0.0  ;;  %v909_v62 = vsel %vm65_vm2, %v1849_v50, 0.0 }
 0x3d7   :  { %v965_v12 = vpack.c.bf16 %v909_v62, %v909_v62  ;;  %v966_v16 = vpack.c.bf16 %v910_v59, %v910_v59 }
 0x3db   :  { %v1823_v30 = vpop.permute.xlu1 %1822  ;;  %v1868_v2 = vpop.permute.xlu2 %1867 }
 0x3dc   :  { %v1825_v32 = vunpack.i.h.bf16 %v1823_v30  ;;  %v1824_v29 = vunpack.i.l.bf16 %v1823_v30  ;;  %v1853_v33 = vpop.permute.xlu0 %1852  ;;  %v1869_v13 = vunpack.i.l.bf16 %v1868_v2  ;;  %v1870_v18 = vunpack.i.h.bf16 %v1868_v2 }
 0x3dd   :  { %v1855_v39 = vunpack.i.h.bf16 %v1853_v33  ;;  %v1854_v40 = vunpack.i.l.bf16 %v1853_v33 }
 0x3de   :  { %v960_v37 = vsel %vm78_vm5, %v1825_v32, 0.0  ;;  %v959_v38 = vsel %vm78_vm5, %v1824_v29, 0.0  ;;  %v933_v30 = vsel %vm72_vm3, %v1869_v13, 0.0  ;;  %v1005_v32 = vunpack.c.l.b16 %v965_v12  ;;  %v1569_v13 = vld [vmem:[%s2608_s7] sm:$0xf] }
 0x3df   :  { %v987_v41 = vpack.c.bf16 %v959_v38, %v959_v38  ;;  %v988_v42 = vpack.c.bf16 %v960_v37, %v960_v37  ;;  %v912_v53 = vsel %vm65_vm2, %v1855_v39, 0.0  ;;  %v911_v54 = vsel %vm65_vm2, %v1854_v40, 0.0 }
 0x3e0   :  { %v967_v5 = vpack.c.bf16 %v911_v54, %v911_v54  ;;  %v968_v6 = vpack.c.bf16 %v912_v53, %v912_v53  ;;  %v1006_v29 = vunpack.c.l.b16 %v966_v16  ;;  %v934_v36 = vsel %vm72_vm3, %v1870_v18, 0.0  ;;  %v1614_v18 = vld [vmem:[%s2608_s7 + $0x14] sm:$0xf] }
 0x3e1   :  { %v1067_v1 = vunpack.c.l.b16 %v987_v41  ;;  %v1068_v52 = vunpack.c.l.b16 %v988_v42  ;;  %v977_v46 = vpack.c.bf16 %v933_v30, %v933_v30  ;;  %v978_v49 = vpack.c.bf16 %v934_v36, %v934_v36 }
 0x3e2   :  { %v1007_v20 = vunpack.c.l.b16 %v967_v5  ;;  %v1008_v26 = vunpack.c.l.b16 %v968_v6  ;;  %v1612_v5 = vld [vmem:[%s2608_s7 + $0x4] sm:$0xf]  ;;  %v1571_v6 = vld [vmem:[%s2608_s7 + $0x8] sm:$0xf0] }
 0x3e3   :  { %v1828_v55 = vpop.permute.xlu1 %1827  ;;  %v1070_v57 = vpack.c.b16 %v1068_v52, %v1067_v1  ;;  %v1009_v1 = vpack.c.b16 %v1006_v29, %v1005_v32  ;;  %v1042_v59 = vunpack.c.l.b16 %v978_v49  ;;  %v1574_v12 = vor.u32 %v1612_v5, %v1571_v6 }
 0x3e4   :  { %v1830_v58 = vunpack.i.h.bf16 %v1828_v55  ;;  %v1829_v60 = vunpack.i.l.bf16 %v1828_v55  ;;  %v1858_v51 = vpop.permute.xlu0 %1857  ;;  %v1010_v37 = vpack.c.b16 %v1008_v26, %v1007_v20 }
 0x3e5   :  { %1146 = vmatpush.bf16.msrb.mxu3 %v1070_v57  ;;  %v1860_v7 = vunpack.i.h.bf16 %v1858_v51  ;;  %v1859_v9 = vunpack.i.l.bf16 %v1858_v51 }
 0x3e6   :  { %v922_v3 = vsel %vm68_vm0, %v1830_v58, 0.0  ;;  %v921_v4 = vsel %vm68_vm0, %v1829_v60, 0.0  ;;  %v1041_v58 = vunpack.c.l.b16 %v977_v46 }
 0x3e7   :  { %v969_v10 = vpack.c.bf16 %v921_v4, %v921_v4  ;;  %v970_v11 = vpack.c.bf16 %v922_v3, %v922_v3  ;;  %v936_v21 = vsel %vm72_vm3, %v1860_v7, 0.0  ;;  %v935_v22 = vsel %vm72_vm3, %v1859_v9, 0.0 }
 0x3e8   :  { %v979_v34 = vpack.c.bf16 %v935_v22, %v935_v22  ;;  %v980_v35 = vpack.c.bf16 %v936_v21, %v936_v21  ;;  %v1045_v9 = vpack.c.b16 %v1042_v59, %v1041_v58  ;;  %v1577_v21 = vld [vmem:[%s2608_s7 + $0x10] sm:$0xf]  ;;  %v1615_v22 = vld [vmem:[%s2608_s7 + $0x14] sm:$0xf0] }
 0x3e9   :  { %1147 = vmatpush.bf16.msrb.mxu3 %v1069_v63  ;;  %v1017_v14 = vunpack.c.l.b16 %v969_v10  ;;  %v1018_v15 = vunpack.c.l.b16 %v970_v11 }
 0x3ea   :  { %v1043_v47 = vunpack.c.l.b16 %v979_v34  ;;  %v1044_v48 = vunpack.c.l.b16 %v980_v35 }
 0x3eb   :  { %v1833_v23 = vpop.permute.xlu1 %1832  ;;  %v1021_v25 = vpack.c.b16 %v1018_v15, %v1017_v14  ;;  %v1613_v14 = vld [vmem:[%s2608_s7 + $0x4] sm:$0xf0] }
 0x3ec   :  { %v1835_v27 = vunpack.i.h.bf16 %v1833_v23  ;;  %v1834_v28 = vunpack.i.l.bf16 %v1833_v23  ;;  %v1873_v31 = vpop.permute.xlu0 %1872  ;;  %v1046_v61 = vpack.c.b16 %v1044_v48, %v1043_v47  ;;  %v1570_v16 = vor.u32 %v1613_v14, %v1569_v13 }
 0x3ed   :  { %1128 = vmatpush.bf16.msrb.mxu1 %v1021_v25  ;;  %1148 = vmatpush.bf16.msrb.mxu3 %v1058_v19  ;;  %v1875_v40 = vunpack.i.h.bf16 %v1873_v31  ;;  %v1874_v41 = vunpack.i.l.bf16 %v1873_v31  ;;  %v1579_v19 = vld [vmem:[%s2608_s7 + $0x18] sm:$0xf0]  ;;  %v1578_v23 = vor.u32 %v1615_v22, %v1577_v21 }
 0x3ee   :  { %v946_v33 = vsel %vm75_vm4, %v1835_v27, 0.0  ;;  %v945_v24 = vsel %vm75_vm4, %v1834_v28, 0.0  ;;  %v1582_v20 = vor.u32 %v1614_v18, %v1579_v19 }
 0x3ef   :  { %v981_v38 = vpack.c.bf16 %v945_v24, %v945_v24  ;;  %v982_v39 = vpack.c.bf16 %v946_v33, %v946_v33  ;;  %v898_v53 = vsel %vm62_vm1, %v1875_v40, 0.0  ;;  %v897_v54 = vsel %vm62_vm1, %v1874_v41, 0.0 }
 0x3f0   :  { %v961_v0 = vpack.c.bf16 %v897_v54, %v897_v54  ;;  %v962_v2 = vpack.c.bf16 %v898_v53, %v898_v53 }
 0x3f1   :  { %1129 = vmatpush.bf16.msrb.mxu1 %v1010_v37  ;;  %v1053_v42 = vunpack.c.l.b16 %v981_v38  ;;  %v1054_v45 = vunpack.c.l.b16 %v982_v39 }
 0x3f2   :  { %v993_v10 = vunpack.c.l.b16 %v961_v0  ;;  %v994_v11 = vunpack.c.l.b16 %v962_v2  ;;  %v1356_v0 = vld [vmem:[%s2609_s10 + $0x8] sm:$0xff]  ;;  %v1495_v2 = vld [vmem:[%s2610_s12] sm:$0xf] }
 0x3f3   :  { %v1863_v50 = vpop.permute.xlu1 %1862  ;;  %v1057_v52 = vpack.c.b16 %v1054_v45, %v1053_v42  ;;  %v1099_v42 = vpop.permute.xlu2 %1098 }
 0x3f4   :  { %v1865_v55 = vunpack.i.h.bf16 %v1863_v50  ;;  %v1864_v57 = vunpack.i.l.bf16 %v1863_v50  ;;  %v997_v15 = vpack.c.b16 %v994_v11, %v993_v10  ;;  %v1084_v28 = vpop.permute.xlu0 %1083 }
 0x3f5   :  { %1130 = vmatpush.bf16.msrb.mxu1 %v1009_v1  ;;  %1149 = vmatpush.bf16.msrb.mxu3 %v1057_v52 }
 0x3f6   :  { %v900_v60 = vsel %vm62_vm1, %v1865_v55, 0.0  ;;  %v899_v51 = vsel %vm62_vm1, %v1864_v57, 0.0 }
 0x3f7   :  { %v963_v62 = vpack.c.bf16 %v899_v51, %v899_v51  ;;  %v964_v63 = vpack.c.bf16 %v900_v60, %v900_v60 }
 0x3f9   :  { %1150 = vmatpush.bf16.msrb.mxu3 %v1046_v61  ;;  %v995_v3 = vunpack.c.l.b16 %v963_v62  ;;  %v996_v4 = vunpack.c.l.b16 %v964_v63  ;;  %v1357_v62 = vld [vmem:[%s2609_s10 + $0x10] sm:$0xff]  ;;  %v1358_v63 = vld [vmem:[%s2609_s10 + $0x18] sm:$0xff] }
 0x3fb   :  { %v998_v7 = vpack.c.b16 %v996_v4, %v995_v3  ;;  %v1094_v25 = vpop.permute.xlu1 %1093  ;;  %v1355_v3 = vld [vmem:[%s2609_s10] sm:$0xff] }
 0x3fd   :  { %1131 = vmatpush.bf16.msrb.mxu1 %v998_v7  ;;  %1151 = vmatpush.bf16.msrb.mxu3 %v1045_v9 }
 0x400   :  { %1583 = vmatmul.msk.bf16.vlgmr.msrb.gmra.mxu3 %vm558_vm6, %v1574_v12 }
 0x401   :  { %1132 = vmatpush.bf16.msrb.mxu1 %v997_v15 }
 0x403   :  { %v1089_v31 = vpop.permute.xlu1 %1088 }
 0x404   :  { %1133 = vmatmul.bf16.vlgmr.msrb.gmra.mxu1 %v1570_v16 }
 0x410   :  { %1584 = vmatmul.msk.bf16.gmra.mxu3 %vm558_vm6, %v1582_v20 }
 0x414   :  { %1138 = vmatmul.bf16.gmra.mxu1 %v1578_v23 }
 0x481   :  { %v1134_v26 = vpop.f32.mrf.mxu1 }
 0x482   :  { %v1135_v30 = vadd.f32 %v1134_v26, %v1084_v28 }
 0x483   :  { %v1153_v27 = vpop.f32.mrf.mxu3 }
 0x484   :  { %v1154_v29 = vadd.f32 %v1153_v27, %v1135_v30 }
 0x486   :  { %v1163_v35 = vmax.f32 %v1154_v29, 0.0 }
 0x488   :  { %v1251_v58 = vpack.c.bf16 %v1163_v35, %v1163_v35 }
 0x489   :  { %v1136_v32 = vpop.f32.mrf.mxu1 }
 0x48a   :  { %v1137_v33 = vadd.f32 %v1136_v32, %v1089_v31  ;;  %v1307_v61 = vunpack.c.l.b16 %v1251_v58 }
 0x48b   :  { %v1155_v24 = vpop.f32.mrf.mxu3 }
 0x48c   :  { %v1156_v34 = vadd.f32 %v1155_v24, %v1137_v33 }
 0x48e   :  { %v1164_v36 = vmax.f32 %v1156_v34, 0.0 }
 0x490   :  { %v1876_v37 = vpack.i.bf16 %v1164_v36, %v1163_v35  ;;  %v1252_v54 = vpack.c.bf16 %v1164_v36, %v1164_v36 }
 0x491   :  { %v1139_v38 = vpop.f32.mrf.mxu1 }
 0x492   :  { %v1140_v39 = vadd.f32 %v1139_v38, %v1094_v25  ;;  %1877 = vrot.lane.b32.xlu1 %v1876_v37, %s1949_s1  ;;  %v1308_v51 = vunpack.c.l.b16 %v1252_v54 }
 0x493   :  { %v1158_v40 = vpop.f32.mrf.mxu3 }
 0x494   :  { %v1159_v41 = vadd.f32 %v1158_v40, %v1140_v39  ;;  %v1311_v59 = vpack.c.b16 %v1308_v51, %v1307_v61 }
 0x496   :  { %v1165_v46 = vmax.f32 %v1159_v41, 0.0 }
 0x498   :  { %v1253_v1 = vpack.c.bf16 %v1165_v46, %v1165_v46 }
 0x499   :  { %v1141_v45 = vpop.f32.mrf.mxu1 }
 0x49a   :  { %v1142_v47 = vadd.f32 %v1141_v45, %v1099_v42  ;;  %v1309_v55 = vunpack.c.l.b16 %v1253_v1 }
 0x49b   :  { %v1160_v48 = vpop.f32.mrf.mxu3 }
 0x49c   :  { %v1161_v49 = vadd.f32 %v1160_v48, %v1142_v47 }
 0x49e   :  { %v1166_v50 = vmax.f32 %v1161_v49, 0.0 }
 0x4a0   :  { %v1896_v52 = vpack.i.bf16 %v1166_v50, %v1165_v46  ;;  %v1254_v53 = vpack.c.bf16 %v1166_v50, %v1166_v50 }
 0x4a2   :  { %1897 = vrot.lane.b32.xlu0 %v1896_v52, %s1938_s17  ;;  %1882 = vrot.lane.b32.xlu2 %v1896_v52, %s1949_s1  ;;  %v1310_v57 = vunpack.c.l.b16 %v1254_v53 }
 0x4a3   :  { %1912 = vrot.lane.b32.xlu1 %v1896_v52, %s1941_s21 }
 0x4a4   :  { %v1312_v60 = vpack.c.b16 %v1310_v57, %v1309_v55 }
 0x4a6   :  { %1403 = vmatpush.bf16.msrb.mxu0 %v1312_v60 }
 0x4aa   :  { %1902 = vrot.lane.b32.xlu0 %v1896_v52, %s1944_s27  ;;  %1887 = vrot.lane.b32.xlu2 %v1876_v37, %s1938_s17 }
 0x4ab   :  { %1917 = vrot.lane.b32.xlu1 %v1896_v52, %s1943_s26  ;;  %1404 = vmatpush.bf16.msrb.mxu0 %v1311_v59 }
 0x4b2   :  { %1907 = vrot.lane.b32.xlu0 %v1876_v37, %s1941_s21  ;;  %1892 = vrot.lane.b32.xlu2 %v1876_v37, %s1944_s27 }
 0x4b3   :  { %1932 = vrot.lane.b32.xlu1 %v1876_v37, %s1939_s18 }
 0x4ba   :  { %1927 = vrot.lane.b32.xlu0 %v1876_v37, %s1943_s26  ;;  %1922 = vrot.lane.b32.xlu2 %v1896_v52, %s1939_s18 }
 0x4bb   :  { %1371 = vperm.xlu1 %1694, %v1357_v62  }
 0x4c2   :  { %1376 = vperm.xlu0 %1693, %v1358_v63   ;;  %1366 = vperm.xlu2 %1695, %v1356_v0  }
 0x4ca   :  { %1498 = vperm.xlu0 %1693, %v1495_v2   ;;  %1361 = vperm.xlu2 %1695, %v1355_v3  }
 0x4fc   :  { %v1883_v4 = vpop.permute.xlu2 %1882 }
 0x4fd   :  { %v1885_v5 = vunpack.i.h.bf16 %v1883_v4  ;;  %v1884_v6 = vunpack.i.l.bf16 %v1883_v4 }
 0x4ff   :  { %v1238_v7 = vsel %vm78_vm5, %v1885_v5, 0.0  ;;  %v1237_v9 = vsel %vm78_vm5, %v1884_v6, 0.0 }
 0x500   :  { %v1265_v10 = vpack.c.bf16 %v1237_v9, %v1237_v9  ;;  %v1266_v11 = vpack.c.bf16 %v1238_v7, %v1238_v7 }
 0x502   :  { %v1345_v12 = vunpack.c.l.b16 %v1265_v10  ;;  %v1346_v13 = vunpack.c.l.b16 %v1266_v11 }
 0x504   :  { %v1878_v14 = vpop.permute.xlu1 %1877  ;;  %v1348_v15 = vpack.c.b16 %v1346_v13, %v1345_v12  ;;  %v1888_v21 = vpop.permute.xlu2 %1887 }
 0x505   :  { %v1880_v16 = vunpack.i.h.bf16 %v1878_v14  ;;  %v1879_v18 = vunpack.i.l.bf16 %v1878_v14  ;;  %v1890_v28 = vunpack.i.h.bf16 %v1888_v21  ;;  %v1889_v30 = vunpack.i.l.bf16 %v1888_v21 }
 0x506   :  { %1424 = vmatpush.bf16.msrb.mxu2 %v1348_v15 }
 0x507   :  { %v1236_v19 = vsel %vm78_vm5, %v1880_v16, 0.0  ;;  %v1235_v20 = vsel %vm78_vm5, %v1879_v18, 0.0  ;;  %v1200_v31 = vsel %vm68_vm0, %v1890_v28, 0.0  ;;  %v1199_v32 = vsel %vm68_vm0, %v1889_v30, 0.0 }
 0x508   :  { %v1263_v22 = vpack.c.bf16 %v1235_v20, %v1235_v20  ;;  %v1264_v23 = vpack.c.bf16 %v1236_v19, %v1236_v19  ;;  %v1247_v36 = vpack.c.bf16 %v1199_v32, %v1199_v32  ;;  %v1248_v37 = vpack.c.bf16 %v1200_v31, %v1200_v31 }
 0x50a   :  { %v1343_v25 = vunpack.c.l.b16 %v1263_v22  ;;  %v1344_v26 = vunpack.c.l.b16 %v1264_v23  ;;  %v1295_v50 = vunpack.c.l.b16 %v1247_v36  ;;  %v1296_v1 = vunpack.c.l.b16 %v1248_v37 }
 0x50c   :  { %v1347_v27 = vpack.c.b16 %v1344_v26, %v1343_v25  ;;  %v1893_v29 = vpop.permute.xlu2 %1892  ;;  %v1299_v0 = vpack.c.b16 %v1296_v1, %v1295_v50 }
 0x50d   :  { %v1895_v40 = vunpack.i.h.bf16 %v1893_v29  ;;  %v1894_v41 = vunpack.i.l.bf16 %v1893_v29 }
 0x50e   :  { %1425 = vmatpush.bf16.msrb.mxu2 %v1347_v27 }
 0x50f   :  { %v1224_v54 = vsel %vm75_vm4, %v1895_v40, 0.0  ;;  %v1223_v55 = vsel %vm75_vm4, %v1894_v41, 0.0 }
 0x510   :  { %v1259_v4 = vpack.c.bf16 %v1223_v55, %v1223_v55  ;;  %v1260_v5 = vpack.c.bf16 %v1224_v54, %v1224_v54 }
 0x512   :  { %v1331_v20 = vunpack.c.l.b16 %v1259_v4  ;;  %v1332_v21 = vunpack.c.l.b16 %v1260_v5  ;;  %v1461_v5 = vld [vmem:[%s2611_s13 + $0x60] sm:$0xff] }
 0x514   :  { %v1898_v33 = vpop.permute.xlu0 %1897  ;;  %v1923_v57 = vpop.permute.xlu2 %1922 }
 0x515   :  { %v1900_v24 = vunpack.i.h.bf16 %v1898_v33  ;;  %v1899_v34 = vunpack.i.l.bf16 %v1898_v33  ;;  %v1913_v35 = vpop.permute.xlu1 %1912  ;;  %v1925_v6 = vunpack.i.h.bf16 %v1923_v57  ;;  %v1924_v7 = vunpack.i.l.bf16 %v1923_v57 }
 0x516   :  { %v1915_v38 = vunpack.i.h.bf16 %v1913_v35  ;;  %v1914_v39 = vunpack.i.l.bf16 %v1913_v35 }
 0x517   :  { %v1202_v42 = vsel %vm68_vm0, %v1900_v24, 0.0  ;;  %v1201_v45 = vsel %vm68_vm0, %v1899_v34, 0.0  ;;  %v1178_v22 = vsel %vm62_vm1, %v1925_v6, 0.0  ;;  %v1177_v23 = vsel %vm62_vm1, %v1924_v7, 0.0  ;;  %v1587_v6 = vld [vmem:[%s2612_s9] sm:$0xf] }
 0x518   :  { %v1249_v46 = vpack.c.bf16 %v1201_v45, %v1201_v45  ;;  %v1250_v47 = vpack.c.bf16 %v1202_v42, %v1202_v42  ;;  %v1190_v48 = vsel %vm65_vm2, %v1915_v38, 0.0  ;;  %v1189_v49 = vsel %vm65_vm2, %v1914_v39, 0.0  ;;  %v1617_v7 = vld [vmem:[%s2612_s9 + $0x4] sm:$0xf0] }
 0x519   :  { %v1245_v51 = vpack.c.bf16 %v1189_v49, %v1189_v49  ;;  %v1246_v61 = vpack.c.bf16 %v1190_v48, %v1190_v48  ;;  %v1335_v34 = vpack.c.b16 %v1332_v21, %v1331_v20  ;;  %v1241_v37 = vpack.c.bf16 %v1177_v23, %v1177_v23  ;;  %v1457_v20 = vld [vmem:[%s2611_s13 + $0x40] sm:$0xff]  ;;  %v1456_v21 = vld [vmem:[%s2611_s13 + $0x38] sm:$0xff] }
 0x51a   :  { %v1297_v52 = vunpack.c.l.b16 %v1249_v46  ;;  %v1298_v53 = vunpack.c.l.b16 %v1250_v47  ;;  %v1242_v38 = vpack.c.bf16 %v1178_v22, %v1178_v22  ;;  %v1464_v47 = vld [vmem:[%s2611_s13 + $0x78] sm:$0xff]  ;;  %v1595_v22 = vld [vmem:[%s2612_s9 + $0x10] sm:$0xf] }
 0x51b   :  { %v1285_v11 = vunpack.c.l.b16 %v1245_v51  ;;  %v1286_v12 = vunpack.c.l.b16 %v1246_v61  ;;  %1620 = vmatpush.msra.mxu1 %v1464_v47  ;;  %v1273_v50 = vunpack.c.l.b16 %v1241_v37  ;;  %v1462_v61 = vld [vmem:[%s2611_s13 + $0x68] sm:$0xff]  ;;  %v1619_v23 = vld [vmem:[%s2612_s9 + $0x14] sm:$0xf0] }
 0x51c   :  { %v1903_v58 = vpop.permute.xlu0 %1902  ;;  %v1300_v60 = vpack.c.b16 %v1298_v53, %v1297_v52  ;;  %v1274_v1 = vunpack.c.l.b16 %v1242_v38  ;;  %v1463_v52 = vld [vmem:[%s2611_s13 + $0x70] sm:$0xff] }
 0x51d   :  { %v1905_v59 = vunpack.i.h.bf16 %v1903_v58  ;;  %v1904_v62 = vunpack.i.l.bf16 %v1903_v58  ;;  %v1918_v63 = vpop.permute.xlu1 %1917  ;;  %v1288_v26 = vpack.c.b16 %v1286_v12, %v1285_v11  ;;  %1622 = vmatpush.msra.mxu1 %v1463_v52  ;;  %v1589_v11 = vld [vmem:[%s2612_s9 + $0x8] sm:$0xf0]  ;;  %v1460_v12 = vld [vmem:[%s2611_s13 + $0x58] sm:$0xff] }
 0x51e   :  { %v1920_v2 = vunpack.i.h.bf16 %v1918_v63  ;;  %v1919_v3 = vunpack.i.l.bf16 %v1918_v63  ;;  %1405 = vmatpush.bf16.msrb.mxu0 %v1300_v60  ;;  %v1276_v63 = vpack.c.b16 %v1274_v1, %v1273_v50 }
 0x51f   :  { %v1226_v9 = vsel %vm75_vm4, %v1905_v59, 0.0  ;;  %v1225_v10 = vsel %vm75_vm4, %v1904_v62, 0.0  ;;  %1624 = vmatpush.msra.mxu1 %v1462_v61 }
 0x520   :  { %v1261_v13 = vpack.c.bf16 %v1225_v10, %v1225_v10  ;;  %v1262_v14 = vpack.c.bf16 %v1226_v9, %v1226_v9  ;;  %v1214_v15 = vsel %vm72_vm3, %v1920_v2, 0.0  ;;  %v1213_v16 = vsel %vm72_vm3, %v1919_v3, 0.0  ;;  %v1616_v10 = vld [vmem:[%s2612_s9 + $0x4] sm:$0xf] }
 0x521   :  { %v1257_v28 = vpack.c.bf16 %v1213_v16, %v1213_v16  ;;  %v1258_v30 = vpack.c.bf16 %v1214_v15, %v1214_v15  ;;  %1626 = vmatpush.msra.mxu1 %v1461_v5  ;;  %v1459_v15 = vld [vmem:[%s2611_s13 + $0x50] sm:$0xff]  ;;  %v1588_v16 = vor.u32 %v1617_v7, %v1587_v6 }
 0x522   :  { %1406 = vmatpush.bf16.msrb.mxu0 %v1299_v0  ;;  %v1333_v18 = vunpack.c.l.b16 %v1261_v13  ;;  %v1334_v19 = vunpack.c.l.b16 %v1262_v14 }
 0x523   :  { %v1321_v41 = vunpack.c.l.b16 %v1257_v28  ;;  %v1322_v42 = vunpack.c.l.b16 %v1258_v30  ;;  %1628 = vmatpush.msra.mxu1 %v1460_v12  ;;  %v1455_v30 = vld [vmem:[%s2611_s13 + $0x30] sm:$0xff] }
 0x524   :  { %v1908_v25 = vpop.permute.xlu0 %1907  ;;  %v1336_v27 = vpack.c.b16 %v1334_v19, %v1333_v18  ;;  %v1592_v18 = vor.u32 %v1616_v10, %v1589_v11  ;;  %v1458_v19 = vld [vmem:[%s2611_s13 + $0x48] sm:$0xff] }
 0x525   :  { %v1910_v31 = vunpack.i.h.bf16 %v1908_v25  ;;  %v1909_v32 = vunpack.i.l.bf16 %v1908_v25  ;;  %v1933_v29 = vpop.permute.xlu1 %1932  ;;  %v1324_v55 = vpack.c.b16 %v1322_v42, %v1321_v41  ;;  %1630 = vmatpush.msra.mxu1 %v1459_v15  ;;  %v1618_v25 = vld [vmem:[%s2612_s9 + $0x14] sm:$0xf] }
 0x526   :  { %v1935_v33 = vunpack.i.h.bf16 %v1933_v29  ;;  %v1934_v24 = vunpack.i.l.bf16 %v1933_v29  ;;  %1407 = vmatpush.bf16.msrb.mxu0 %v1288_v26  ;;  %1426 = vmatpush.bf16.msrb.mxu2 %v1336_v27  ;;  %v1597_v26 = vld [vmem:[%s2612_s9 + $0x18] sm:$0xf0]  ;;  %v1596_v27 = vor.u32 %v1619_v23, %v1595_v22 }
 0x527   :  { %v1188_v35 = vsel %vm65_vm2, %v1910_v31, 0.0  ;;  %v1187_v36 = vsel %vm65_vm2, %v1909_v32, 0.0  ;;  %1632 = vmatpush.msra.mxu1 %v1458_v19  ;;  %v1600_v28 = vor.u32 %v1618_v25, %v1597_v26  ;;  %v1454_v31 = vld [vmem:[%s2611_s13 + $0x28] sm:$0xff]  ;;  %v1453_v32 = vld [vmem:[%s2611_s13 + $0x20] sm:$0xff]  ;;  %v1452_v29 = vld [vmem:[%s2611_s13 + $0x18] sm:$0xff] }
 0x528   :  { %v1243_v39 = vpack.c.bf16 %v1187_v36, %v1187_v36  ;;  %v1244_v40 = vpack.c.bf16 %v1188_v35, %v1188_v35  ;;  %v1176_v45 = vsel %vm62_vm1, %v1935_v33, 0.0  ;;  %v1175_v46 = vsel %vm62_vm1, %v1934_v24, 0.0  ;;  %v1451_v33 = vld [vmem:[%s2611_s13 + $0x10] sm:$0xff]  ;;  %v1450_v24 = vld [vmem:[%s2611_s13 + $0x8] sm:$0xff]  ;;  %v1367_v35 = vpop.permute.xlu2 %1366 }
 0x529   :  { %v1239_v57 = vpack.c.bf16 %v1175_v46, %v1175_v46  ;;  %v1240_v58 = vpack.c.bf16 %v1176_v45, %v1176_v45  ;;  %1634 = vmatpush.msra.mxu1 %v1457_v20 }
 0x52a   :  { %1427 = vmatpush.bf16.msrb.mxu2 %v1335_v34  ;;  %v1283_v48 = vunpack.c.l.b16 %v1243_v39  ;;  %v1284_v49 = vunpack.c.l.b16 %v1244_v40  ;;  %v1449_v34 = vld [vmem:[%s2611_s13] sm:$0xff] }
 0x52b   :  { %v1271_v0 = vunpack.c.l.b16 %v1239_v57  ;;  %v1272_v2 = vunpack.c.l.b16 %v1240_v58  ;;  %1636 = vmatpush.msra.mxu1 %v1456_v21 }
 0x52c   :  { %v1928_v53 = vpop.permute.xlu0 %1927  ;;  %v1287_v54 = vpack.c.b16 %v1284_v49, %v1283_v48 }
 0x52d   :  { %v1930_v60 = vunpack.i.h.bf16 %v1928_v53  ;;  %v1929_v51 = vunpack.i.l.bf16 %v1928_v53  ;;  %v1275_v13 = vpack.c.b16 %v1272_v2, %v1271_v0  ;;  %1638 = vmatpush.msra.mxu1 %v1455_v30 }
 0x52e   :  { %1408 = vmatpush.bf16.msrb.mxu0 %v1287_v54  ;;  %1428 = vmatpush.bf16.msrb.mxu2 %v1324_v55 }
 0x52f   :  { %v1212_v59 = vsel %vm72_vm3, %v1930_v60, 0.0  ;;  %v1211_v62 = vsel %vm72_vm3, %v1929_v51, 0.0  ;;  %1640 = vmatpush.msra.mxu1 %v1454_v31 }
 0x530   :  { %v1255_v3 = vpack.c.bf16 %v1211_v62, %v1211_v62  ;;  %v1256_v4 = vpack.c.bf16 %v1212_v59, %v1212_v59  ;;  %v1362_v37 = vpop.permute.xlu2 %1361 }
 0x531   :  { %1642 = vmatpush.msra.mxu1 %v1453_v32 }
 0x532   :  { %1409 = vmatpush.bf16.msrb.mxu0 %v1276_v63  ;;  %v1319_v17 = vunpack.c.l.b16 %v1255_v3  ;;  %v1320_v9 = vunpack.c.l.b16 %v1256_v4 }
 0x533   :  { %1644 = vmatpush.msra.mxu1 %v1452_v29 }
 0x534   :  { %v1323_v14 = vpack.c.b16 %v1320_v9, %v1319_v17  ;;  %v1377_v51 = vpop.permute.xlu0 %1376 }
 0x535   :  { %1646 = vmatpush.msra.mxu1 %v1451_v33 }
 0x536   :  { %1410 = vmatpush.bf16.msrb.mxu0 %v1275_v13  ;;  %1429 = vmatpush.bf16.msrb.mxu2 %v1323_v14 }
 0x537   :  { %1648 = vmatpush.msra.mxu1 %v1450_v24 }
 0x539   :  { %1411 = vmatmul.bf16.vlgmr.msrb.gmra.mxu0 %v1588_v16  ;;  %1601 = vmatmul.msk.bf16.vlgmr.msrb.gmra.mxu2 %vm558_vm6, %v1592_v18 }
 0x53a   :  { %1465 = vmatpush.msra.mxu0 %v1464_v47  ;;  %1621 = vmatpush.msra.mxu2 %v1464_v47 }
 0x53b   :  { %1650 = vmatpush.msra.mxu1 %v1449_v34 }
 0x53c   :  { %1466 = vmatpush.msra.mxu0 %v1463_v52  ;;  %1623 = vmatpush.msra.mxu2 %v1463_v52  ;;  %v1372_v52 = vpop.permute.xlu1 %1371  ;;  %v1499_v4 = vpop.permute.xlu0 %1498 }
 0x53e   :  { %1467 = vmatpush.msra.mxu0 %v1462_v61  ;;  %1625 = vmatpush.msra.mxu2 %v1462_v61 }
 0x540   :  { %1468 = vmatpush.msra.mxu0 %v1461_v5  ;;  %1627 = vmatpush.msra.mxu2 %v1461_v5 }
 0x542   :  { %1469 = vmatpush.msra.mxu0 %v1460_v12  ;;  %1629 = vmatpush.msra.mxu2 %v1460_v12 }
 0x544   :  { %1470 = vmatpush.msra.mxu0 %v1459_v15  ;;  %1631 = vmatpush.msra.mxu2 %v1459_v15 }
 0x546   :  { %1471 = vmatpush.msra.mxu0 %v1458_v19  ;;  %1633 = vmatpush.msra.mxu2 %v1458_v19 }
 0x548   :  { %1472 = vmatpush.msra.mxu0 %v1457_v20  ;;  %1635 = vmatpush.msra.mxu2 %v1457_v20 }
 0x549   :  { %1416 = vmatmul.bf16.gmra.mxu0 %v1596_v27  ;;  %1602 = vmatmul.msk.bf16.gmra.mxu2 %vm558_vm6, %v1600_v28 }
 0x54a   :  { %1473 = vmatpush.msra.mxu0 %v1456_v21  ;;  %1637 = vmatpush.msra.mxu2 %v1456_v21 }
 0x54c   :  { %1474 = vmatpush.msra.mxu0 %v1455_v30  ;;  %1639 = vmatpush.msra.mxu2 %v1455_v30 }
 0x54e   :  { %1475 = vmatpush.msra.mxu0 %v1454_v31  ;;  %1641 = vmatpush.msra.mxu2 %v1454_v31 }
 0x550   :  { %1476 = vmatpush.msra.mxu0 %v1453_v32  ;;  %1643 = vmatpush.msra.mxu2 %v1453_v32 }
 0x552   :  { %1477 = vmatpush.msra.mxu0 %v1452_v29  ;;  %1645 = vmatpush.msra.mxu2 %v1452_v29 }
 0x554   :  { %1478 = vmatpush.msra.mxu0 %v1451_v33  ;;  %1647 = vmatpush.msra.mxu2 %v1451_v33 }
 0x556   :  { %1479 = vmatpush.msra.mxu0 %v1450_v24  ;;  %1649 = vmatpush.msra.mxu2 %v1450_v24 }
 0x558   :  { %1480 = vmatpush.msra.mxu0 %v1449_v34  ;;  %1651 = vmatpush.msra.mxu2 %v1449_v34 }
 0x5b6   :  { %v1412_v36 = vpop.f32.mrf.mxu0 }
 0x5b7   :  { %v1413_v38 = vadd.f32 %v1412_v36, %v1362_v37 }
 0x5bc   :  { %v1431_v39 = vpop.f32.mrf.mxu2 }
 0x5bd   :  { %v1432_v40 = vadd.f32 %v1431_v39, %v1413_v38 }
 0x5be   :  { %v1414_v41 = vpop.f32.mrf.mxu0 }
 0x5bf   :  { %v1441_v42 = vadd.f32 %v1432_v40, %v2321_v43  ;;  %v1415_v46 = vadd.f32 %v1414_v41, %v1367_v35 }
 0x5c1   :  { %v1445_v45 = vmax.f32 %v1441_v42, 0.0 }
 0x5c3   :  { %1481 = vmatmul.f32.vlgmr.msra.gmra.mxu0 %v1445_v45 }
 0x5c4   :  { %v1433_v47 = vpop.f32.mrf.mxu2 }
 0x5c5   :  { %v1434_v48 = vadd.f32 %v1433_v47, %v1415_v46 }
 0x5c6   :  { %v1417_v49 = vpop.f32.mrf.mxu0 }
 0x5c7   :  { %v1442_v50 = vadd.f32 %v1434_v48, %v2323_v44  ;;  %v1418_v53 = vadd.f32 %v1417_v49, %v1372_v52 }
 0x5c9   :  { %v1446_v1 = vmax.f32 %v1442_v50, 0.0 }
 0x5cb   :  { %1484 = vmatmul.f32.vlgmr.msra.gmra.mxu1 %v1446_v1 }
 0x5cc   :  { %v1436_v54 = vpop.f32.mrf.mxu2 }
 0x5cd   :  { %v1437_v55 = vadd.f32 %v1436_v54, %v1418_v53 }
 0x5ce   :  { %v1419_v58 = vpop.f32.mrf.mxu0 }
 0x5cf   :  { %v1443_v57 = vadd.f32 %v1437_v55, %v2329_v8  ;;  %v1420_v43 = vadd.f32 %v1419_v58, %v1377_v51  ;;  %v1494_v8 = vld [vmem:[%s2613_s11] sm:$0xf] }
 0x5d1   :  { %v1447_v60 = vmax.f32 %v1443_v57, 0.0 }
 0x5d3   :  { %1487 = vmatmul.f32.gmra.mxu1 %v1447_v60 }
 0x5d4   :  { %v1438_v61 = vpop.f32.mrf.mxu2 }
 0x5d5   :  { %v1439_v59 = vadd.f32 %v1438_v61, %v1420_v43 }
 0x5d7   :  { %v1444_v62 = vadd.f32 %v1439_v59, %v2332_v56 }
 0x5d9   :  { %v1448_v63 = vmax.f32 %v1444_v62, 0.0 }
 0x5db   :  { %1490 = vmatmul.f32.vlgmr.msra.gmra.mxu2 %v1448_v63 }
 0x640   :  { %v1482_v3 = vpop.f32.mrf.mxu0 }
 0x648   :  { %v1485_v44 = vpop.f32.mrf.mxu1 }
 0x650   :  { %v1488_v2 = vpop.f32.mrf.mxu1 }
 0x65e   :  { %v1491_v0 = vpop.f32.mrf.mxu2 }
 0x65f   :  { %1517 = vmatpush.msra.mxu3 %v1491_v0 }
 0x661   :  { %1518 = vmatpush.msra.mxu3 %v1488_v2 }
 0x663   :  { %1519 = vmatpush.msra.mxu3 %v1485_v44 }
 0x665   :  { %1520 = vmatpush.msra.mxu3 %v1482_v3 }
 0x666   :  { %1603 = vmatmul.msk.f32.vlgmr.msra.gmra.mxu3 %vm1501_vm7, %v1494_v8 }
 0x6e9   :  { %v1522_v5 = vpop.f32.mrf.mxu3 }
 0x6ea   :  { %v1523_v56 = vadd.f32 %v1522_v5, %v1499_v4 }
 0x6ec   :  { %1526 = vst.msk [vmem:[%s2614_s14] sm:$0xf] %vm1525_vm8, %v1523_v56 }

</bundles_post_ra>
